<compile_context>
chip_gen: v7x
topology: tpu7x:2x2x1
jax: 0.10.0
libtpu: 0.0.40
codegen_flags: <defaults>
</compile_context>

<pallas_src>
import math
import functools

import jax
import jax.numpy as jnp
from jax import lax
from jax.experimental import pallas as pl
from jax.experimental.pallas import tpu as pltpu
import numpy as np


# ----------------------------------------------------------------------------
# in-kernel LayerNorm (torch semantics: unbiased std, eps added to std)
# ----------------------------------------------------------------------------

def _layer_norm(x, gamma, beta, eps):
    d = x.shape[-1]
    mean = jnp.mean(x, axis=-1, keepdims=True)
    diff = x - mean
    var = jnp.sum(diff * diff, axis=-1, keepdims=True) * (1.0 / (d - 1))
    inv = pl.reciprocal(jnp.sqrt(var) + eps)          # exact reciprocal-multiply
    return gamma * diff * inv + beta


# ----------------------------------------------------------------------------
# fused encoder-layer kernel: one grid step == one (batch, head) row block
# ----------------------------------------------------------------------------

def _encoder_layer_kernel(
    x_ref, wqkv_ref, bqkv_ref, wo_ref, w1_ref, b1_ref, w2_ref, vecs_ref,
    out_ref, attnw_ref,
    *, n_head, dim, dim_head, rows_per_head, eps, compute_dtype):
    """The PyTorch head split (.view(B*n_head, L, dim_head) of a contiguous
    (B, L, dim) tensor) makes head h of batch b own rows
    [h*rows_per_head, (h+1)*rows_per_head) of that batch's (L, dim) slab,
    reinterpreted row-major as (L, dim_head).  We compute in head-major
    permuted row order (j, r): q/k/v become n_head lane-slices + one sublane
    concat.  Softmax/attention are permutation-equivariant, so only the
    attention-weights output is permuted (fixed up in the wrapper)."""
    L = n_head * rows_per_head
    scale = 1.0 / math.sqrt(dim_head)
    cd = compute_dtype
    f32 = jnp.float32

    x = x_ref[...]                                          # (rph, dim) f32

    # ---- fused QKV projection: one MXU matmul (bf16 operands, f32 accum) ----
    qkv = jnp.dot(x.astype(cd), wqkv_ref[...],
                  preferred_element_type=f32) + bqkv_ref[...]   # (rph, 3*dim)

    def heads_rows(off):
        # permuted (head-major) (L, dim_head) operand built from the
        # (rows_per_head, dim) slab: n_head lane-slices + one sublane concat.
        return jnp.concatenate(
            [qkv[:, off + j * dim_head: off + (j + 1) * dim_head]
             for j in range(n_head)], axis=0).astype(cd)

    qp = heads_rows(0)                                      # (L, dh)
    kp = heads_rows(dim)                                    # (L, dh)
    vp = heads_rows(2 * dim)                                # (L, dh)

    # ---- scaled dot-product attention (this head, permuted row order) ----
    sp = lax.dot_general(qp, kp, (((1,), (1,)), ((), ())),
                         preferred_element_type=f32) * scale    # (L, L)
    m = jnp.max(sp, axis=-1, keepdims=True)
    e = jnp.exp(sp - m)                                          # f32 softmax
    wp = e * pl.reciprocal(jnp.sum(e, axis=-1, keepdims=True), approx=True)
    attnw_ref[...] = wp.astype(attnw_ref.dtype)  # permuted; un-permuted outside

    wsp = jnp.dot(wp.astype(cd), vp, preferred_element_type=f32)  # (L, dh)
    # back to the (rows_per_head, dim) activation layout (inverse permutation):
    # n_head sublane-slices + one lane concat.
    ws = jnp.concatenate(
        [wsp[j * rows_per_head:(j + 1) * rows_per_head, :] for j in range(n_head)],
        axis=1)                                                  # (rph, dim)

    # ---- packed per-feature vectors (one (8, dim) slab) ----
    vecs = vecs_ref[...]
    bo, g1, be1 = vecs[0:1, :], vecs[1:2, :], vecs[2:3, :]
    b2, g2, be2 = vecs[3:4, :], vecs[4:5, :], vecs[5:6, :]

    # ---- out-proj + dropout(identity) + residual + LayerNorm 1 ----
    attn_out = jnp.dot(ws.astype(cd), wo_ref[...],
                       preferred_element_type=f32) + bo
    h1 = _layer_norm(attn_out + x, g1, be1, eps)

    # ---- position-wise FFN + residual + LayerNorm 2 ----
    ff = jnp.maximum(
        jnp.dot(h1.astype(cd), w1_ref[...], preferred_element_type=f32)
        + b1_ref[...], 0.0)
    ff = jnp.dot(ff.astype(cd), w2_ref[...], preferred_element_type=f32) + b2
    out_ref[...] = _layer_norm(ff + h1, g2, be2, eps).astype(out_ref.dtype)


# ----------------------------------------------------------------------------
# wrapper: one pallas_call for the whole encoder layer
# ----------------------------------------------------------------------------

def _encoder_layer_forward(x, params, n_head, eps, compute_dtype):
    B, L, dim = x.shape
    assert dim % n_head == 0, "dim must be divisible by n_head"
    assert L % n_head == 0, "the contiguous .view() head split needs L % n_head == 0"
    dim_head = dim // n_head
    rph = L // n_head
    assert rph % 8 == 0, "rows_per_head must be sublane (8) aligned for the row blocks"
    ffn_hidden = params["w1_t"].shape[1]
    f32 = jnp.float32

    x2d = x.reshape(B * L, dim).astype(f32)

    # fused QKV weight/bias; weights stored in the MXU compute dtype
    wqkv = jnp.concatenate([params["wq_t"], params["wk_t"], params["wv_t"]],
                           axis=1).astype(compute_dtype)
    bqkv = jnp.concatenate([params["bq"], params["bk"], params["bv"]]
                           ).reshape(1, 3 * dim).astype(f32)
    wo = params["wo_t"].astype(compute_dtype)
    w1 = params["w1_t"].astype(compute_dtype)
    w2 = params["w2_t"].astype(compute_dtype)
    b1 = params["b1"].reshape(1, ffn_hidden).astype(f32)
    # pack the six dim-wide vectors into one (8, dim) slab (2 rows of zero pad)
    zeros = jnp.zeros((dim,), f32)
    vecs = jnp.stack([params["bo"], params["gamma1"], params["beta1"],
                      params["b2"], params["gamma2"], params["beta2"],
                      zeros, zeros], axis=0).astype(f32)

    kernel = functools.partial(
        _encoder_layer_kernel, n_head=n_head, dim=dim, dim_head=dim_head,
        rows_per_head=rph, eps=eps, compute_dtype=compute_dtype)

    row_map = lambda b, h: (b * n_head + h, 0)     # per-(batch, head) row block
    rep_map = lambda b, h: (0, 0)                  # replicated weights / biases

    out2d, attnw_p = pl.pallas_call(
        kernel,
        out_shape=(
            jax.ShapeDtypeStruct((B * L, dim), f32),
            jax.ShapeDtypeStruct((B * n_head * L, L), f32),
        ),
        grid_spec=pltpu.PrefetchScalarGridSpec(
            num_scalar_prefetch=0,
            grid=(B, n_head),
            in_specs=[
                pl.BlockSpec((rph, dim), row_map),           # x rows for this head
                pl.BlockSpec((dim, 3 * dim), rep_map),       # fused QKV weight
                pl.BlockSpec((1, 3 * dim), rep_map),         # fused QKV bias
                pl.BlockSpec((dim, dim), rep_map),           # out-proj weight
                pl.BlockSpec((dim, ffn_hidden), rep_map),    # FFN linear_1 weight
                pl.BlockSpec((1, ffn_hidden), rep_map),      # FFN linear_1 bias
                pl.BlockSpec((ffn_hidden, dim), rep_map),    # FFN linear_2 weight
                pl.BlockSpec((8, dim), rep_map),             # packed bias/gamma/beta
            ],
            out_specs=[
                pl.BlockSpec((rph, dim), row_map),           # encoder output rows
                pl.BlockSpec((L, L), row_map),               # attn weights (permuted)
            ],
        ),
        compiler_params=pltpu.CompilerParams(
            dimension_semantics=("parallel", "parallel"),    # megacore over (B, heads)
            vmem_limit_bytes=48 * 1024 * 1024),
    )(x2d, wqkv, bqkv, wo, w1, b1, w2, vecs)

    out = out2d.reshape(B, L, dim).astype(x.dtype)
    # Undo the in-kernel head-major (j, r) / (i, s) ordering of the attention
    # weights: pure reshape/transpose layout plumbing outside the kernel.
    attn_w = (attnw_p
              .reshape(B, n_head, n_head, rph, n_head, rph)
              .transpose(0, 1, 3, 2, 5, 4)
              .reshape(B, n_head, L, L))
    return out, attn_w


encoder_layer_forward = jax.jit(_encoder_layer_forward, static_argnums=(2, 3, 4))


# ----------------------------------------------------------------------------
# pure-JAX f32 reference (mirrors the PyTorch module) for correctness checks
# ----------------------------------------------------------------------------

def _ref_layer_norm(x, gamma, beta, eps):
    d = x.shape[-1]
    mean = x.mean(-1, keepdims=True)
    var = ((x - mean) ** 2).sum(-1, keepdims=True) / (d - 1)   # unbiased, like torch.std
    std = jnp.sqrt(var)
    return gamma * (x - mean) / (std + eps) + beta


def reference_encoder_layer(x, params, n_head, eps):
    B, L, dim = x.shape
    dh = dim // n_head
    x2d = x.reshape(B * L, dim)
    q = (x2d @ params["wq_t"] + params["bq"]).reshape(B * n_head, L, dh)
    k = (x2d @ params["wk_t"] + params["bk"]).reshape(B * n_head, L, dh)
    v = (x2d @ params["wv_t"] + params["bv"]).reshape(B * n_head, L, dh)
    scores = jnp.einsum("gld,gmd->glm", q, k) / math.sqrt(dh)
    w = jax.nn.softmax(scores, axis=-1)
    ws = jnp.einsum("glm,gmd->gld", w, v).reshape(B * L, dim)
    attn_out = ws @ params["wo_t"] + params["bo"]
    h1 = _ref_layer_norm(attn_out + x2d, params["gamma1"], params["beta1"], eps)
    ff = jnp.maximum(h1 @ params["w1_t"] + params["b1"], 0.0)
    ff = ff @ params["w2_t"] + params["b2"]
    out = _ref_layer_norm(ff + h1, params["gamma2"], params["beta2"], eps)
    return out.reshape(B, L, dim), w.reshape(B, n_head, L, L)


# ----------------------------------------------------------------------------
# main
# ----------------------------------------------------------------------------

if __name__ == "__main__":
    # (8,128)-aligned demo shapes (perf review: don't benchmark L=8/dim=32).
    B, L, dim, n_head, ffn_hidden = 2, 128, 128, 4, 256
    eps = 1e-6

    key = jax.random.PRNGKey(0)
    (kx, kq, kk, kv, ko, kbq, kbk, kbv, kbo,
     kw1, kb1, kw2, kb2, kg1, kt1, kg2, kt2) = jax.random.split(key, 17)

    bd = 1.0 / math.sqrt(dim)          # nn.Linear default init range (fan_in = dim)
    bh = 1.0 / math.sqrt(ffn_hidden)   # fan_in = ffn_hidden for linear_2

    params = {
        "wq_t": jax.random.uniform(kq, (dim, dim), jnp.float32, -bd, bd),
        "wk_t": jax.random.uniform(kk, (dim, dim), jnp.float32, -bd, bd),
        "wv_t": jax.random.uniform(kv, (dim, dim), jnp.float32, -bd, bd),
        "wo_t": jax.random.uniform(ko, (dim, dim), jnp.float32, -bd, bd),
        "bq": jax.random.uniform(kbq, (dim,), jnp.float32, -bd, bd),
        "bk": jax.random.uniform(kbk, (dim,), jnp.float32, -bd, bd),
        "bv": jax.random.uniform(kbv, (dim,), jnp.float32, -bd, bd),
        "bo": jax.random.uniform(kbo, (dim,), jnp.float32, -bd, bd),
        "w1_t": jax.random.uniform(kw1, (dim, ffn_hidden), jnp.float32, -bd, bd),
        "b1": jax.random.uniform(kb1, (ffn_hidden,), jnp.float32, -bd, bd),
        "w2_t": jax.random.uniform(kw2, (ffn_hidden, dim), jnp.float32, -bh, bh),
        "b2": jax.random.uniform(kb2, (dim,), jnp.float32, -bh, bh),
        "gamma1": 1.0 + 0.1 * jax.random.normal(kg1, (dim,), jnp.float32),
        "beta1": 0.1 * jax.random.normal(kt1, (dim,), jnp.float32),
        "gamma2": 1.0 + 0.1 * jax.random.normal(kg2, (dim,), jnp.float32),
        "beta2": 0.1 * jax.random.normal(kt2, (dim,), jnp.float32),
    }

    x = jax.random.normal(kx, (B, L, dim), jnp.float32)

    ref_out, ref_w = reference_encoder_layer(x, params, n_head, eps)

    # Exact-ish path (f32 MXU operands): tight tolerance validates the fused
    # structure, head-split permutation and LayerNorm semantics.
    out32, w32 = encoder_layer_forward(x, params, n_head, eps, jnp.float32)
    out32 = jax.block_until_ready(out32)
    w32 = jax.block_until_ready(w32)
    np.testing.assert_allclose(np.asarray(out32), np.asarray(ref_out),
                               rtol=5e-3, atol=5e-3)
    np.testing.assert_allclose(np.asarray(w32), np.asarray(ref_w),
                               rtol=5e-3, atol=5e-3)

    # Fast path (bf16 MXU operands, f32 accumulation): relaxed tolerance as
    # anticipated by the perf review.
    out, attn_w = encoder_layer_forward(x, params, n_head, eps, jnp.bfloat16)
    out = jax.block_until_ready(out)
    attn_w = jax.block_until_ready(attn_w)
    np.testing.assert_allclose(np.asarray(out), np.asarray(ref_out),
                               rtol=5e-2, atol=5e-2)
    np.testing.assert_allclose(np.asarray(attn_w), np.asarray(ref_w),
                               rtol=2e-2, atol=2e-2)

    assert out.shape == (B, L, dim)
    assert attn_w.shape == (B, n_head, L, L)

    print("KERNEL_OK")
</pallas_src>

<mosaic_0001>
module attributes {stable_mosaic.version = 11 : i64} {
  func.func @_encoder_layer_kernel(%arg0: i32, %arg1: i32, %arg2: memref<32x128xf32, #tpu.memory_space<vmem>>, %arg3: memref<128x384xf32, #tpu.memory_space<vmem>>, %arg4: memref<1x384xf32, #tpu.memory_space<vmem>>, %arg5: memref<128x128xf32, #tpu.memory_space<vmem>>, %arg6: memref<128x256xf32, #tpu.memory_space<vmem>>, %arg7: memref<1x256xf32, #tpu.memory_space<vmem>>, %arg8: memref<256x128xf32, #tpu.memory_space<vmem>>, %arg9: memref<8x128xf32, #tpu.memory_space<vmem>>, %arg10: memref<32x128xf32, #tpu.memory_space<vmem>>, %arg11: memref<128x128xf32, #tpu.memory_space<vmem>>) attributes {dimension_semantics = [#tpu.dimension_semantics<parallel>, #tpu.dimension_semantics<parallel>], iteration_bounds = array<i64: 2, 4>, scalar_prefetch = 0 : i64, scratch_operands = 0 : i64, tpu.core_type = #tpu.core_type<tc>, window_params = [{transform_indices = @transform_0, window_bounds = array<i64: 32, 128>}, {pipeline_mode = #tpu.pipeline_mode<synchronous>, transform_indices = @transform_1, window_bounds = array<i64: 128, 384>}, {pipeline_mode = #tpu.pipeline_mode<synchronous>, transform_indices = @transform_2, window_bounds = array<i64: 1, 384>}, {pipeline_mode = #tpu.pipeline_mode<synchronous>, transform_indices = @transform_3, window_bounds = array<i64: 128, 128>}, {pipeline_mode = #tpu.pipeline_mode<synchronous>, transform_indices = @transform_4, window_bounds = array<i64: 128, 256>}, {pipeline_mode = #tpu.pipeline_mode<synchronous>, transform_indices = @transform_5, window_bounds = array<i64: 1, 256>}, {pipeline_mode = #tpu.pipeline_mode<synchronous>, transform_indices = @transform_6, window_bounds = array<i64: 256, 128>}, {pipeline_mode = #tpu.pipeline_mode<synchronous>, transform_indices = @transform_7, window_bounds = array<i64: 8, 128>}, {transform_indices = @transform_8, window_bounds = array<i64: 32, 128>}, {transform_indices = @transform_9, window_bounds = array<i64: 128, 128>}]} {
    %c0 = arith.constant 0 : index
    %c0_0 = arith.constant 0 : index
    %0 = vector.load %arg2[%c0, %c0_0] : memref<32x128xf32, #tpu.memory_space<vmem>>, vector<32x128xf32>
    %c0_1 = arith.constant 0 : index
    %c0_2 = arith.constant 0 : index
    %1 = vector.load %arg3[%c0_1, %c0_2] : memref<128x384xf32, #tpu.memory_space<vmem>>, vector<128x384xf32>
    %cst = arith.constant dense<0.000000e+00> : vector<32x384xf32>
    %2 = tpu.matmul %0, %1, %cst {dimension_numbers = #tpu.dot_dimension_numbers<[1], [0], [0], [1], [0, 0, 1, 1], [], []>} : vector<32x128xf32>, vector<128x384xf32>, vector<32x384xf32> -> vector<32x384xf32>
    %c0_3 = arith.constant 0 : index
    %c0_4 = arith.constant 0 : index
    %3 = vector.load %arg4[%c0_3, %c0_4] : memref<1x384xf32, #tpu.memory_space<vmem>>, vector<1x384xf32>
    %4 = vector.broadcast %3 : vector<1x384xf32> to vector<32x384xf32>
    %5 = arith.addf %2, %4 : vector<32x384xf32>
    %6 = vector.extract_strided_slice %5 {offsets = [0, 0], sizes = [32, 32], strides = [1, 1]} : vector<32x384xf32> to vector<32x32xf32>
    %7 = vector.extract_strided_slice %5 {offsets = [0, 32], sizes = [32, 32], strides = [1, 1]} : vector<32x384xf32> to vector<32x32xf32>
    %8 = vector.extract_strided_slice %5 {offsets = [0, 64], sizes = [32, 32], strides = [1, 1]} : vector<32x384xf32> to vector<32x32xf32>
    %9 = vector.extract_strided_slice %5 {offsets = [0, 96], sizes = [32, 32], strides = [1, 1]} : vector<32x384xf32> to vector<32x32xf32>
    %10 = tpu.concatenate %6, %7, %8, %9 in 0 : vector<32x32xf32>, vector<32x32xf32>, vector<32x32xf32>, vector<32x32xf32> -> vector<128x32xf32>
    %11 = vector.extract_strided_slice %5 {offsets = [0, 128], sizes = [32, 32], strides = [1, 1]} : vector<32x384xf32> to vector<32x32xf32>
    %12 = vector.extract_strided_slice %5 {offsets = [0, 160], sizes = [32, 32], strides = [1, 1]} : vector<32x384xf32> to vector<32x32xf32>
    %13 = vector.extract_strided_slice %5 {offsets = [0, 192], sizes = [32, 32], strides = [1, 1]} : vector<32x384xf32> to vector<32x32xf32>
    %14 = vector.extract_strided_slice %5 {offsets = [0, 224], sizes = [32, 32], strides = [1, 1]} : vector<32x384xf32> to vector<32x32xf32>
    %15 = tpu.concatenate %11, %12, %13, %14 in 0 : vector<32x32xf32>, vector<32x32xf32>, vector<32x32xf32>, vector<32x32xf32> -> vector<128x32xf32>
    %16 = vector.extract_strided_slice %5 {offsets = [0, 256], sizes = [32, 32], strides = [1, 1]} : vector<32x384xf32> to vector<32x32xf32>
    %17 = vector.extract_strided_slice %5 {offsets = [0, 288], sizes = [32, 32], strides = [1, 1]} : vector<32x384xf32> to vector<32x32xf32>
    %18 = vector.extract_strided_slice %5 {offsets = [0, 320], sizes = [32, 32], strides = [1, 1]} : vector<32x384xf32> to vector<32x32xf32>
    %19 = vector.extract_strided_slice %5 {offsets = [0, 352], sizes = [32, 32], strides = [1, 1]} : vector<32x384xf32> to vector<32x32xf32>
    %20 = tpu.concatenate %16, %17, %18, %19 in 0 : vector<32x32xf32>, vector<32x32xf32>, vector<32x32xf32>, vector<32x32xf32> -> vector<128x32xf32>
    %cst_5 = arith.constant dense<0.000000e+00> : vector<128x128xf32>
    %21 = tpu.matmul %10, %15, %cst_5 {dimension_numbers = #tpu.dot_dimension_numbers<[1], [1], [0], [0], [0, 0, 1, 0], [], []>} : vector<128x32xf32>, vector<128x32xf32>, vector<128x128xf32> -> vector<128x128xf32>
    %cst_6 = arith.constant 0.176776692 : f32
    %22 = vector.broadcast %cst_6 : f32 to vector<128x128xf32>
    %23 = arith.mulf %21, %22 : vector<128x128xf32>
    %cst_7 = arith.constant dense<0xFF800000> : vector<128xf32>
    %24 = vector.multi_reduction <maximumf>, %23, %cst_7 [1] : vector<128x128xf32> to vector<128xf32>
    %25 = vector.shape_cast %24 : vector<128xf32> to vector<128x1xf32>
    %26 = vector.broadcast %25 : vector<128x1xf32> to vector<128x128xf32>
    %27 = arith.subf %23, %26 : vector<128x128xf32>
    %28 = math.exp %27 : vector<128x128xf32>
    %cst_8 = arith.constant dense<0.000000e+00> : vector<128xf32>
    %29 = vector.multi_reduction <add>, %28, %cst_8 [1] : vector<128x128xf32> to vector<128xf32>
    %30 = vector.shape_cast %29 : vector<128xf32> to vector<128x1xf32>
    %31 = tpu.reciprocal %30 {approx = true} : vector<128x1xf32> -> vector<128x1xf32>
    %32 = vector.broadcast %31 : vector<128x1xf32> to vector<128x128xf32>
    %33 = arith.mulf %28, %32 : vector<128x128xf32>
    %c0_9 = arith.constant 0 : index
    %c0_10 = arith.constant 0 : index
    %34 = vector.load %arg11[%c0_9, %c0_10] : memref<128x128xf32, #tpu.memory_space<vmem>>, vector<128x128xf32>
    tpu.vector_store %arg11[%c0_9, %c0_10], %33 {strides = array<i32>} : memref<128x128xf32, #tpu.memory_space<vmem>>, vector<128x128xf32>,
    %cst_11 = arith.constant dense<0.000000e+00> : vector<128x32xf32>
    %35 = tpu.matmul %33, %20, %cst_11 {dimension_numbers = #tpu.dot_dimension_numbers<[1], [0], [0], [1], [0, 0, 1, 1], [], []>} : vector<128x128xf32>, vector<128x32xf32>, vector<128x32xf32> -> vector<128x32xf32>
    %36 = vector.extract_strided_slice %35 {offsets = [0, 0], sizes = [32, 32], strides = [1, 1]} : vector<128x32xf32> to vector<32x32xf32>
    %37 = vector.extract_strided_slice %35 {offsets = [32, 0], sizes = [32, 32], strides = [1, 1]} : vector<128x32xf32> to vector<32x32xf32>
    %38 = vector.extract_strided_slice %35 {offsets = [64, 0], sizes = [32, 32], strides = [1, 1]} : vector<128x32xf32> to vector<32x32xf32>
    %39 = vector.extract_strided_slice %35 {offsets = [96, 0], sizes = [32, 32], strides = [1, 1]} : vector<128x32xf32> to vector<32x32xf32>
    %40 = tpu.concatenate %36, %37, %38, %39 in 1 : vector<32x32xf32>, vector<32x32xf32>, vector<32x32xf32>, vector<32x32xf32> -> vector<32x128xf32>
    %c0_12 = arith.constant 0 : index
    %c0_13 = arith.constant 0 : index
    %41 = vector.load %arg9[%c0_12, %c0_13] : memref<8x128xf32, #tpu.memory_space<vmem>>, vector<8x128xf32>
    %42 = vector.extract_strided_slice %41 {offsets = [0, 0], sizes = [1, 128], strides = [1, 1]} : vector<8x128xf32> to vector<1x128xf32>
    %43 = vector.extract_strided_slice %41 {offsets = [1, 0], sizes = [1, 128], strides = [1, 1]} : vector<8x128xf32> to vector<1x128xf32>
    %44 = vector.extract_strided_slice %41 {offsets = [2, 0], sizes = [1, 128], strides = [1, 1]} : vector<8x128xf32> to vector<1x128xf32>
    %45 = vector.extract_strided_slice %41 {offsets = [3, 0], sizes = [1, 128], strides = [1, 1]} : vector<8x128xf32> to vector<1x128xf32>
    %46 = vector.extract_strided_slice %41 {offsets = [4, 0], sizes = [1, 128], strides = [1, 1]} : vector<8x128xf32> to vector<1x128xf32>
    %47 = vector.extract_strided_slice %41 {offsets = [5, 0], sizes = [1, 128], strides = [1, 1]} : vector<8x128xf32> to vector<1x128xf32>
    %c0_14 = arith.constant 0 : index
    %c0_15 = arith.constant 0 : index
    %48 = vector.load %arg5[%c0_14, %c0_15] : memref<128x128xf32, #tpu.memory_space<vmem>>, vector<128x128xf32>
    %cst_16 = arith.constant dense<0.000000e+00> : vector<32x128xf32>
    %49 = tpu.matmul %40, %48, %cst_16 {dimension_numbers = #tpu.dot_dimension_numbers<[1], [0], [0], [1], [0, 0, 1, 1], [], []>} : vector<32x128xf32>, vector<128x128xf32>, vector<32x128xf32> -> vector<32x128xf32>
    %50 = vector.broadcast %42 : vector<1x128xf32> to vector<32x128xf32>
    %51 = arith.addf %49, %50 : vector<32x128xf32>
    %52 = arith.addf %51, %0 : vector<32x128xf32>
    %cst_17 = arith.constant dense<0.000000e+00> : vector<32xf32>
    %53 = vector.multi_reduction <add>, %52, %cst_17 [1] : vector<32x128xf32> to vector<32xf32>
    %54 = vector.shape_cast %53 : vector<32xf32> to vector<32x1xf32>
    %cst_18 = arith.constant 1.280000e+02 : f32
    %55 = vector.broadcast %cst_18 : f32 to vector<32x1xf32>
    %56 = arith.divf %54, %55 : vector<32x1xf32>
    %57 = vector.broadcast %56 : vector<32x1xf32> to vector<32x128xf32>
    %58 = arith.subf %52, %57 : vector<32x128xf32>
    %59 = arith.mulf %58, %58 : vector<32x128xf32>
    %cst_19 = arith.constant dense<0.000000e+00> : vector<32xf32>
    %60 = vector.multi_reduction <add>, %59, %cst_19 [1] : vector<32x128xf32> to vector<32xf32>
    %61 = vector.shape_cast %60 : vector<32xf32> to vector<32x1xf32>
    %cst_20 = arith.constant 0.00787401571 : f32
    %62 = vector.broadcast %cst_20 : f32 to vector<32x1xf32>
    %63 = arith.mulf %61, %62 : vector<32x1xf32>
    %64 = math.sqrt %63 : vector<32x1xf32>
    %cst_21 = arith.constant 9.99999997E-7 : f32
    %65 = vector.broadcast %cst_21 : f32 to vector<32x1xf32>
    %66 = arith.addf %64, %65 : vector<32x1xf32>
    %67 = tpu.reciprocal %66 : vector<32x1xf32> -> vector<32x1xf32>
    %68 = vector.broadcast %43 : vector<1x128xf32> to vector<32x128xf32>
    %69 = arith.mulf %68, %58 : vector<32x128xf32>
    %70 = vector.broadcast %67 : vector<32x1xf32> to vector<32x128xf32>
    %71 = arith.mulf %69, %70 : vector<32x128xf32>
    %72 = vector.broadcast %44 : vector<1x128xf32> to vector<32x128xf32>
    %73 = arith.addf %71, %72 : vector<32x128xf32>
    %c0_22 = arith.constant 0 : index
    %c0_23 = arith.constant 0 : index
    %74 = vector.load %arg6[%c0_22, %c0_23] : memref<128x256xf32, #tpu.memory_space<vmem>>, vector<128x256xf32>
    %cst_24 = arith.constant dense<0.000000e+00> : vector<32x256xf32>
    %75 = tpu.matmul %73, %74, %cst_24 {dimension_numbers = #tpu.dot_dimension_numbers<[1], [0], [0], [1], [0, 0, 1, 1], [], []>} : vector<32x128xf32>, vector<128x256xf32>, vector<32x256xf32> -> vector<32x256xf32>
    %c0_25 = arith.constant 0 : index
    %c0_26 = arith.constant 0 : index
    %76 = vector.load %arg7[%c0_25, %c0_26] : memref<1x256xf32, #tpu.memory_space<vmem>>, vector<1x256xf32>
    %77 = vector.broadcast %76 : vector<1x256xf32> to vector<32x256xf32>
    %78 = arith.addf %75, %77 : vector<32x256xf32>
    %cst_27 = arith.constant 0.000000e+00 : f32
    %79 = vector.broadcast %cst_27 : f32 to vector<32x256xf32>
    %80 = arith.maximumf %78, %79 : vector<32x256xf32>
    %c0_28 = arith.constant 0 : index
    %c0_29 = arith.constant 0 : index
    %81 = vector.load %arg8[%c0_28, %c0_29] : memref<256x128xf32, #tpu.memory_space<vmem>>, vector<256x128xf32>
    %cst_30 = arith.constant dense<0.000000e+00> : vector<32x128xf32>
    %82 = tpu.matmul %80, %81, %cst_30 {dimension_numbers = #tpu.dot_dimension_numbers<[1], [0], [0], [1], [0, 0, 1, 1], [], []>} : vector<32x256xf32>, vector<256x128xf32>, vector<32x128xf32> -> vector<32x128xf32>
    %83 = vector.broadcast %45 : vector<1x128xf32> to vector<32x128xf32>
    %84 = arith.addf %82, %83 : vector<32x128xf32>
    %85 = arith.addf %84, %73 : vector<32x128xf32>
    %cst_31 = arith.constant dense<0.000000e+00> : vector<32xf32>
    %86 = vector.multi_reduction <add>, %85, %cst_31 [1] : vector<32x128xf32> to vector<32xf32>
    %87 = vector.shape_cast %86 : vector<32xf32> to vector<32x1xf32>
    %cst_32 = arith.constant 1.280000e+02 : f32
    %88 = vector.broadcast %cst_32 : f32 to vector<32x1xf32>
    %89 = arith.divf %87, %88 : vector<32x1xf32>
    %90 = vector.broadcast %89 : vector<32x1xf32> to vector<32x128xf32>
    %91 = arith.subf %85, %90 : vector<32x128xf32>
    %92 = arith.mulf %91, %91 : vector<32x128xf32>
    %cst_33 = arith.constant dense<0.000000e+00> : vector<32xf32>
    %93 = vector.multi_reduction <add>, %92, %cst_33 [1] : vector<32x128xf32> to vector<32xf32>
    %94 = vector.shape_cast %93 : vector<32xf32> to vector<32x1xf32>
    %cst_34 = arith.constant 0.00787401571 : f32
    %95 = vector.broadcast %cst_34 : f32 to vector<32x1xf32>
    %96 = arith.mulf %94, %95 : vector<32x1xf32>
    %97 = math.sqrt %96 : vector<32x1xf32>
    %cst_35 = arith.constant 9.99999997E-7 : f32
    %98 = vector.broadcast %cst_35 : f32 to vector<32x1xf32>
    %99 = arith.addf %97, %98 : vector<32x1xf32>
    %100 = tpu.reciprocal %99 : vector<32x1xf32> -> vector<32x1xf32>
    %101 = vector.broadcast %46 : vector<1x128xf32> to vector<32x128xf32>
    %102 = arith.mulf %101, %91 : vector<32x128xf32>
    %103 = vector.broadcast %100 : vector<32x1xf32> to vector<32x128xf32>
    %104 = arith.mulf %102, %103 : vector<32x128xf32>
    %105 = vector.broadcast %47 : vector<1x128xf32> to vector<32x128xf32>
    %106 = arith.addf %104, %105 : vector<32x128xf32>
    %c0_36 = arith.constant 0 : index
    %c0_37 = arith.constant 0 : index
    %107 = vector.load %arg10[%c0_36, %c0_37] : memref<32x128xf32, #tpu.memory_space<vmem>>, vector<32x128xf32>
    tpu.vector_store %arg10[%c0_36, %c0_37], %106 {strides = array<i32>} : memref<32x128xf32, #tpu.memory_space<vmem>>, vector<32x128xf32>,
    return
  }
  func.func @transform_0(%arg0: i32, %arg1: i32) -> (i32, i32) {
    %c4_i32 = arith.constant 4 : i32
    %0 = arith.muli %arg0, %c4_i32 : i32
    %1 = arith.addi %0, %arg1 : i32
    %c0_i32 = arith.constant 0 : i32
    %c0_i32_0 = arith.constant 0 : i32
    return %1, %c0_i32 : i32, i32
  }
  func.func @transform_1(%arg0: i32, %arg1: i32) -> (i32, i32) {
    %c0_i32 = arith.constant 0 : i32
    %c0_i32_0 = arith.constant 0 : i32
    %c0_i32_1 = arith.constant 0 : i32
    return %c0_i32, %c0_i32_0 : i32, i32
  }
  func.func @transform_2(%arg0: i32, %arg1: i32) -> (i32, i32) {
    %c0_i32 = arith.constant 0 : i32
    %c0_i32_0 = arith.constant 0 : i32
    %c0_i32_1 = arith.constant 0 : i32
    return %c0_i32, %c0_i32_0 : i32, i32
  }
  func.func @transform_3(%arg0: i32, %arg1: i32) -> (i32, i32) {
    %c0_i32 = arith.constant 0 : i32
    %c0_i32_0 = arith.constant 0 : i32
    %c0_i32_1 = arith.constant 0 : i32
    return %c0_i32, %c0_i32_0 : i32, i32
  }
  func.func @transform_4(%arg0: i32, %arg1: i32) -> (i32, i32) {
    %c0_i32 = arith.constant 0 : i32
    %c0_i32_0 = arith.constant 0 : i32
    %c0_i32_1 = arith.constant 0 : i32
    return %c0_i32, %c0_i32_0 : i32, i32
  }
  func.func @transform_5(%arg0: i32, %arg1: i32) -> (i32, i32) {
    %c0_i32 = arith.constant 0 : i32
    %c0_i32_0 = arith.constant 0 : i32
    %c0_i32_1 = arith.constant 0 : i32
    return %c0_i32, %c0_i32_0 : i32, i32
  }
  func.func @transform_6(%arg0: i32, %arg1: i32) -> (i32, i32) {
    %c0_i32 = arith.constant 0 : i32
    %c0_i32_0 = arith.constant 0 : i32
    %c0_i32_1 = arith.constant 0 : i32
    return %c0_i32, %c0_i32_0 : i32, i32
  }
  func.func @transform_7(%arg0: i32, %arg1: i32) -> (i32, i32) {
    %c0_i32 = arith.constant 0 : i32
    %c0_i32_0 = arith.constant 0 : i32
    %c0_i32_1 = arith.constant 0 : i32
    return %c0_i32, %c0_i32_0 : i32, i32
  }
  func.func @transform_8(%arg0: i32, %arg1: i32) -> (i32, i32) {
    %c4_i32 = arith.constant 4 : i32
    %0 = arith.muli %arg0, %c4_i32 : i32
    %1 = arith.addi %0, %arg1 : i32
    %c0_i32 = arith.constant 0 : i32
    %c0_i32_0 = arith.constant 0 : i32
    return %1, %c0_i32 : i32, i32
  }
  func.func @transform_9(%arg0: i32, %arg1: i32) -> (i32, i32) {
    %c4_i32 = arith.constant 4 : i32
    %0 = arith.muli %arg0, %c4_i32 : i32
    %1 = arith.addi %0, %arg1 : i32
    %c0_i32 = arith.constant 0 : i32
    %c0_i32_0 = arith.constant 0 : i32
    return %1, %c0_i32 : i32, i32
  }
}

</mosaic_0001>

<bundles_post_ra>
// kernel: _encoder_layer_forward.1
= control target key start
LH: loop header
LB: loop body
LE: loop exit
PB: predicated region body
PF: predicated region fallthrough
CT: control target
= control target key end

     0   :  { %s4248_s0 = inlined_call_operand.hbm [shape: f32[256,128], index: 0, kind: input, shape index: {}]   ;;  %s4249_s1 = inlined_call_operand.vmem [shape: f32[128,384], index: 1, kind: input, shape index: {}]   ;;  %s4250_s2 = inlined_call_operand.vmem [shape: f32[1,384], index: 2, kind: input, shape index: {}]   ;;  %s4251_s3 = inlined_call_operand.hbm [shape: f32[128,128], index: 3, kind: input, shape index: {}]   ;;  %s4252_s4 = inlined_call_operand.hbm [shape: f32[128,256], index: 4, kind: input, shape index: {}]   ;;  %s4253_s5 = inlined_call_operand.hbm [shape: f32[1,256], index: 5, kind: input, shape index: {}]   ;;  %s4254_s6 = inlined_call_operand.hbm [shape: f32[256,128], index: 6, kind: input, shape index: {}]   ;;  %s4255_s7 = inlined_call_operand.vmem [shape: f32[8,128], index: 7, kind: input, shape index: {}]   ;;  %s4256_s8 = inlined_call_operand.hbm [shape: f32[256,128], index: 8, kind: output, shape index: {0}]   ;;  %s4257_s9 = inlined_call_operand.vmem [shape: f32[1024,128], index: 9, kind: output, shape index: {1}]  }
   0x1   :  { %4269 = sst [smem:[#allocation20_spill]] %s4250_s2 }
   0x2   :  { %4270 = sst [smem:[#allocation21_spill]] %s4251_s3 }
   0x3   :  { %4271 = sst [smem:[#allocation22_spill]] %s4252_s4 }
   0x4   :  { %4272 = sst [smem:[#allocation23_spill]] %s4253_s5 }
   0x5   :  { %4273 = sst [smem:[#allocation24_spill]] %s4255_s7 }
   0x6   :  { %4274 = sst [smem:[#allocation25_spill]] %s4256_s8 }
   0x7   :  { %4275 = sst [smem:[#allocation26_spill]] %s4257_s9 }
   0x8   :  { %15 = vsyncpa [#allocation3], 0 }
   0x9   :  { %17 = vsyncpa [#allocation3 + $0x1], 0 }
   0xa   :  { %18 = vsyncpa [#allocation6], 0 }
   0xb   :  { %19 = vsyncpa [#allocation9], 0 }
   0xc   :  { %20 = vsyncpa [#allocation4], 0 }
   0xd   :  { %22 = vsyncpa [#allocation4 + $0x1], 0  ;;  %s3409_s30 = smov 0   ;;  %s3411_s10 = smov 0  }
   0xe   :  { %s3413_s11 = smov 0   ;;  %s3415_s12 = smov 0  }
   0xf   :  { %s3417_s13 = smov 0   ;;  %s3419_s14 = smov 0  }
  0x10   :  { %s3421_s15 = smov 0   ;;  %s3423_s16 = smov 0  }
  0x11 LB: > { %4276 = sst [smem:[#allocation16_spill]] %s3313_s30  ;;  %s2130_s17 = sadd.s32 4294967295, %s3341_s16   ;;  %s3341_s16 = sphi %s3423_s16, %s28_s16   ;;  %s3337_s15 = sphi %s3421_s15, %s4316_s15   ;;  %s3333_s14 = sphi %s3419_s14, %s4315_s14   ;;  %s3329_s13 = sphi %s3417_s13, %s4314_s13   ;;  %s3325_s12 = sphi %s3415_s12, %s4313_s12   ;;  %s3321_s11 = sphi %s3413_s11, %s4312_s11   ;;  %s3317_s10 = sphi %s3411_s10, %s4311_s10   ;;  %s3313_s30 = sphi %s3409_s30, %s4310_s30  }
  0x12   : > { %4277 = sst [smem:[#allocation17_spill]] %s3325_s12  ;;  %s2131_s18 = sadd.s32 4294967294, %s3341_s16  }
  0x13   : > { %4278 = sst [smem:[#allocation18_spill]] %s3329_s13  ;;  %p64_p0 = scmp.ne.s32.totalorder %s3317_s10, %s3313_s30 }
  0x14   : > { %p3453_p1 = scmp.eq.s32.totalorder %s2130_s17, 0  ;;  %p3457_p2 = scmp.eq.s32.totalorder %s2130_s17, 7 }
  0x15   : > { %p245_p3 = scmp.eq.s32.totalorder %s2131_s18, 7  ;;  %p2138_p5 = scmp.ge.s32.totalorder %s3341_s16, 1 }
  0x16   : > { %s4279_s19 = scalar_select %p3453_p1, 1, 0 }
  0x17   : > { %s4280_s20 = scalar_select %p3457_p2, 1, 0 }
  0x18   : > { %p3463_p4 = por %p3453_p1, %p64_p0  ;;  %p3468_p6 = por %p245_p3, %p64_p0 }
  0x19   : > { %p282_p7 = scmp.lt.s32.totalorder %s3341_s16, 9  ;;  %s3343_s24 = smov [#allocation5]  }
  0x1a   : > { %s4281_s21 = scalar_select %p3463_p4, 1, 0 }
  0x1b   : > { %s4282_s22 = scalar_select %p3468_p6, 1, 0 }
  0x1c   : > { %p3473_p8 = pnand %p2138_p5, %p282_p7  ;;  %s300_s25 = sshll.u32 %s3343_s24, 4  ;;  %s3477_s25 = int_to_ptr.vmem [resolvable:$true] %s300_s25 }
  0x1d   : > { %4283 = sst [smem:[#allocation19_spill]] %s4282_s22  ;;  %s3344_s27 = smov [#allocation8]  }
  0x1e   : > { %s4284_s23 = scalar_select %p3473_p8, 1, 0 }
  0x1f   : > { %p2794_p9 = pneg %p3473_p8  ;;  %s327_s28 = sshll.u32 %s3344_s27, 4  ;;  %s3487_s28 = int_to_ptr.vmem [resolvable:$true] %s327_s28 }
  0x20   : > { %s3345_s29 = smov [#allocation7]   ;;  %s4286_s3 = sld [smem:[#allocation21_spill]] }
  0x21   : > { %p3483_p10 = pnand %p2794_p9, %p3453_p1  ;;  %s3489_s17 = sshll.u32 %s3345_s29, 4  ;;  %s314_s17 = int_to_ptr.vmem [resolvable:$true] %s3489_s17 }
  0x23   : > { %p3499_p12 = pneg %p3483_p10 }
  0x26   : > { %s3093_s24 = scalar_lea.hbm %s4286_s3, 2048 }
  0x27   : > { %p3094_p11 = scmp.ne.s32.totalorder %s4286_s3, %s3093_s24  ;;  %p3100_p3 = scmp.lt.u32.totalorder %s3093_s24, %s4286_s3 }
  0x29   : > { %p3096_p13 = pnand %p3499_p12, %p3094_p11 }
  0x2b   : > { %p3097_p0 = pneg %p3096_p13 }
  0x2d   : > { %p3102_p5 = pnand %p3100_p3, %p3097_p0 }
  0x2f   : > { %3105 = shalt.err (!%p3102_p5)
}
  0x30   : > { %s3106_s8 = scalar_lea.vmem %s3477_s25, 2048  ;;  %p3114_p1 = scmp.lt.s32.totalorder %s3477_s25, %s3477_s25 }
  0x31   : > { %p3107_p7 = scmp.ne.s32.totalorder %s3477_s25, %s3106_s8  ;;  %p3115_p4 = scmp.lt.s32.totalorder %s3106_s8, %s3106_s8 }
  0x33   : > { %p3109_p9 = pnand %p3107_p7, %p3499_p12  ;;  %p3116_p11 = por %p3115_p4, %p3114_p1 }
  0x35   : > { %p3110_p6 = pneg %p3109_p9 }
  0x37   : > { %p3117_p13 = pnand %p3116_p11, %p3110_p6 }
  0x39   : > { %3120 = shalt.err (!%p3117_p13)
}
  0x3a   : > { %s4265_s30 = smov 128   ;;  %s4267_s22 = smov 8  }
  0x3b   : > { %2797 = dma.hbm_to_vmem [thread:$0]  (!%p3483_p10), %s4286_s3, 2048, %s3477_s25, [#allocation6], %s4265_s30, %s4265_s30, %s4267_s22  }
  0x3c   : > { %s4288_s5 = sld [smem:[#allocation23_spill]] }
  0x42   : > { %s3121_s8 = scalar_lea.hbm %s4288_s5, 32 }
  0x43   : > { %p3122_p1 = scmp.ne.s32.totalorder %s4288_s5, %s3121_s8  ;;  %p3128_p0 = scmp.lt.u32.totalorder %s3121_s8, %s4288_s5 }
  0x45   : > { %p3124_p4 = pnand %p3122_p1, %p3499_p12 }
  0x47   : > { %p3125_p6 = pneg %p3124_p4 }
  0x49   : > { %p3130_p3 = pnand %p3128_p0, %p3125_p6 }
  0x4b   : > { %3133 = shalt.err (!%p3130_p3)
}
  0x4c   : > { %s3134_s25 = scalar_lea.vmem %s3487_s28, 32  ;;  %p3142_p11 = scmp.lt.s32.totalorder %s3487_s28, %s3487_s28 }
  0x4d   : > { %p3135_p5 = scmp.ne.s32.totalorder %s3487_s28, %s3134_s25  ;;  %p3143_p13 = scmp.lt.s32.totalorder %s3134_s25, %s3134_s25 }
  0x4f   : > { %p3137_p7 = pnand %p3135_p5, %p3499_p12  ;;  %p3144_p1 = por %p3143_p13, %p3142_p11 }
  0x51   : > { %p3138_p9 = pneg %p3137_p7 }
  0x53   : > { %p3145_p4 = pnand %p3144_p1, %p3138_p9 }
  0x55   : > { %3148 = shalt.err (!%p3145_p4)
}
  0x56   : > { %2803 = dma.hbm_to_vmem [thread:$0]  (!%p3483_p10), %s4288_s5, 32, %s3487_s28, [#allocation9]  }
  0x57   : > { %s4289_s4 = sld [smem:[#allocation22_spill]] }
  0x5d   : > { %s3149_s18 = scalar_lea.hbm %s4289_s4, 4096 }
  0x5e   : > { %p3150_p6 = scmp.ne.s32.totalorder %s4289_s4, %s3149_s18  ;;  %p3156_p5 = scmp.lt.u32.totalorder %s3149_s18, %s4289_s4 }
  0x60   : > { %p3152_p0 = pnand %p3150_p6, %p3499_p12 }
  0x62   : > { %p3153_p3 = pneg %p3152_p0 }
  0x64   : > { %p3158_p7 = pnand %p3156_p5, %p3153_p3 }
  0x66   : > { %3161 = shalt.err (!%p3158_p7)
}
  0x67   : > { %s3162_s25 = scalar_lea.vmem %s314_s17, 4096  ;;  %p3170_p1 = scmp.lt.s32.totalorder %s314_s17, %s314_s17 }
  0x68   : > { %p3163_p9 = scmp.ne.s32.totalorder %s314_s17, %s3162_s25  ;;  %p3171_p4 = scmp.lt.s32.totalorder %s3162_s25, %s3162_s25 }
  0x6a   : > { %p3165_p11 = pnand %p3163_p9, %p3499_p12  ;;  %p3172_p8 = por %p3171_p4, %p3170_p1 }
  0x6c   : > { %p3166_p13 = pneg %p3165_p11 }
  0x6e   : > { %p3173_p2 = pnand %p3172_p8, %p3166_p13 }
  0x70   : > { %3176 = shalt.err (!%p3173_p2)
}
  0x71   : > { %s3348_s28 = smov 256   ;;  %s3349_s2 = smov 16  }
  0x72   : > { %2800 = dma.hbm_to_vmem [thread:$0]  (!%p3483_p10), %s4289_s4, 4096, %s314_s17, [#allocation6], %s3348_s28, %s3348_s28, %s3349_s2  }
  0x73   : > { %s3350_s13 = smov [#allocation10]   ;;  %s3177_s29 = scalar_lea.hbm %s4254_s6, 4096 }
  0x74   : > { %s337_s18 = sshll.u32 %s3350_s13, 4  ;;  %p3178_p2 = scmp.ne.s32.totalorder %s4254_s6, %s3177_s29  ;;  %s338_s18 = int_to_ptr.vmem [resolvable:$true] %s337_s18 }
  0x75   : > { %p3184_p0 = scmp.lt.u32.totalorder %s3177_s29, %s4254_s6 }
  0x76   : > { %p3180_p8 = pnand %p3178_p2, %p3499_p12 }
  0x78   : > { %p3181_p6 = pneg %p3180_p8 }
  0x7a   : > { %p3186_p3 = pnand %p3184_p0, %p3181_p6 }
  0x7c   : > { %3189 = shalt.err (!%p3186_p3)
}
  0x7d   : > { %s3190_s17 = scalar_lea.vmem %s338_s18, 4096  ;;  %p3198_p11 = scmp.lt.s32.totalorder %s338_s18, %s338_s18 }
  0x7e   : > { %p3191_p5 = scmp.ne.s32.totalorder %s338_s18, %s3190_s17  ;;  %p3199_p13 = scmp.lt.s32.totalorder %s3190_s17, %s3190_s17 }
  0x80   : > { %p3193_p7 = pnand %p3191_p5, %p3499_p12  ;;  %p3200_p1 = por %p3199_p13, %p3198_p11 }
  0x82   : > { %p3194_p9 = pneg %p3193_p7 }
  0x84   : > { %p3201_p4 = pnand %p3200_p1, %p3194_p9 }
  0x86   : > { %3204 = shalt.err (!%p3201_p4)
}
  0x87   : > { %s4290_s28 = smov 8   ;;  %s4291_s2 = smov 128  }
  0x88   : > { %2806 = dma.hbm_to_vmem [thread:$0]  (!%p3483_p10), %s4254_s6, 4096, %s338_s18, [#allocation9], %s4291_s2, %s4291_s2, %s4290_s28  }
  0x89   : > { %s37_s7 = sadd.s32 1, %s3333_s14  ;;  %s40_s26 = sadd.s32 1, %s3337_s15 }
  0x8a   : > { %p38_p12 = scmp.ge.s32.totalorder %s37_s7, 4  ;;  %s2132_s9 = sshll.u32 %s3337_s15, 2 }
  0x8b   : > { %s45_s12 = sadd.s32 %s3333_s14, %s2132_s9  ;;  %s51_s13 = sadd.s32 1, %s3321_s11 }
  0x8c   : > { %s4318_s7 = smov (%p38_p12, %s37_s7), 0  ;;  %s4320_s26 = smov (!%p38_p12, %s40_s26), %s3337_s15 }
  0x8d   : > { %p58_p2 = scmp.ne.s32.totalorder %s3321_s11, %s3317_s10  ;;  %p59_p8 = scmp.eq.s32.totalorder %s3341_s16, 0 }
  0x8e   : > { %p42_p6 = scmp.ge.s32.totalorder %s4320_s26, 2  ;;  %p2819_p0 = scmp.lt.s32.totalorder %s3341_s16, 8 }
  0x8f   : > { %p3598_p3 = por %p59_p8, %p58_p2  ;;  %p4293_p10 = scmp.ne.s32.totalorder %s4280_s20, 0 }
  0x90   : > { %s4322_s26 = smov (%p42_p6, %s4320_s26), 0  ;;  %s354_s27 = sand.u32 1, %s3321_s11  }
  0x91   : > { %p3604_p5 = por %p4293_p10, %p58_p2  ;;  %s2196_s29 = sshll.u32 %s45_s12, 9 }
  0x92   : > { %s2133_s8 = sshll.u32 %s4322_s26, 2  ;;  %s2144_s17 = sshll.u32 %s354_s27, 5 }
  0x93   : > { %s47_s25 = sadd.s32 %s2133_s8, %s4318_s7  ;;  %s3616_s3 = scalar_lea.hbm %s4248_s0, %s2196_s29 }
  0x94   : > { %s48_s30 = ssub.s32 %s45_s12, %s47_s25  ;;  %s358_s20 = scalar_lea.vmem [#allocation2], %s2144_s17 }
  0x95   : > { %p49_p7 = scmp.eq.s32.totalorder %s48_s30, 0  ;;  %s367_s4 = sshll.u32 %s358_s20, 4  ;;  %s3629_s4 = int_to_ptr.vmem [resolvable:$true] %s367_s4 }
  0x96   : > { %p3622_p9 = pnand %p2819_p0, %p3598_p3  ;;  %s3631_s29 = scalar_lea.sflag [#allocation3], %s354_s27 }
  0x97   : > { %s3627_s12 = scalar_select %p49_p7, %s3321_s11, %s51_s13  }
  0x98   : > { %s3205_s8 = scalar_lea.hbm %s3616_s3, 512  ;;  %p3207_p13 = pneg %p3622_p9 }
  0x99   : > { %p3206_p11 = scmp.ne.s32.totalorder %s3616_s3, %s3205_s8  ;;  %s3210_s17 = scalar_lea.hbm %s4248_s0, 4096 }
  0x9a   : > { %p3211_p12 = scmp.lt.u32.totalorder %s3616_s3, %s4248_s0  ;;  %p3212_p2 = scmp.lt.u32.totalorder %s3210_s17, %s3205_s8 }
  0x9b   : > { %p3208_p1 = pnand %p3207_p13, %p3206_p11  ;;  %p3214_p6 = scmp.lt.u32.totalorder %s3205_s8, %s3616_s3 }
  0x9c   : > { %p3213_p8 = por %p3212_p2, %p3211_p12 }
  0x9d   : > { %p3209_p4 = pneg %p3208_p1 }
  0x9e   : > { %p3215_p0 = por %p3214_p6, %p3213_p8 }
  0xa0   : > { %p3216_p3 = pnand %p3215_p0, %p3209_p4 }
  0xa2   : > { %3219 = shalt.err (!%p3216_p3)
}
  0xa3   : > { %s3220_s13 = scalar_lea.vmem %s3629_s4, 512  ;;  %s3351_s27 = smov [#allocation2]  }
  0xa4   : > { %p3221_p10 = scmp.ne.s32.totalorder %s3629_s4, %s3220_s13  ;;  %s3225_s9 = sshll.u32 %s3351_s27, 4  ;;  %s3226_s9 = int_to_ptr.vmem [resolvable:$false] %s3225_s9 }
  0xa5   : > { %s3227_s20 = scalar_lea.vmem %s3226_s9, 1024  ;;  %p3228_p1 = scmp.lt.s32.totalorder %s3629_s4, %s3226_s9 }
  0xa6   : > { %p3223_p7 = pnand %p3221_p10, %p3207_p13  ;;  %p3229_p12 = scmp.lt.s32.totalorder %s3227_s20, %s3220_s13 }
  0xa8   : > { %p3224_p11 = pneg %p3223_p7  ;;  %p3230_p2 = por %p3229_p12, %p3228_p1 }
  0xaa   : > { %p3231_p8 = pnand %p3230_p2, %p3224_p11 }
  0xac   : > { %3234 = shalt.err (!%p3231_p8)
}
  0xad   : > { %2810 = dma.hbm_to_vmem [thread:$0]  (!%p3622_p9), %s3616_s3, 512, %s3629_s4, %s3631_s29, %s4291_s2, %s4291_s2, %s4290_s28  }
  0xae   : > { %p4296_p13 = scmp.ne.s32.totalorder %s4284_s23, 0 }
  0xaf   : > { %s3665_s8 = sand.u32 (!%p4296_p13), 1, %s3317_s10   ;;  %p4297_p4 = scmp.ne.s32.totalorder (!%p4296_p13), %s4281_s21, 0 }
  0xb0   : > { %379 = sbr.rel (%p4296_p13) target bundleno = 2872 (0xb38), region = 52  ;;  %s2149_s24 = sshll.u32 (!%p4296_p13), %s3665_s8, 5 }
  0xb1   : > { %s382_s25 = scalar_lea.sflag (!%p4296_p13), [#allocation3], %s3665_s8  ;;  %s3671_s5 = scalar_lea.vmem (!%p4296_p13), [#allocation2], %s2149_s24 }
  0xb7   : > { %3296 = dma.done.wait (%p4297_p4), %s382_s25, 512  }
  0xb8   : > { %3298 = vsyncadd (%p4297_p4), %s382_s25, 4294966784  ;;  %p4298_p9 = scmp.ne.s32.totalorder %s4279_s19, 0 }
  0xba   : > { %3300 = dma.done.wait (%p4298_p9), [#allocation6], 6144  }
  0xbb   : > { %3302 = vsyncadd (%p4298_p9), [#allocation6], 4294961152 }
  0xbc   : > { %3304 = dma.done.wait (%p4298_p9), [#allocation9], 4128  }
  0xbd   : > { %3306 = vsyncadd (%p4298_p9), [#allocation9], 4294963168  ;;  %v3352_v0 = vmov 0.0   ;;  %v464_v1 = vld [vmem:[%s4249_s1 + $0x8] sm:$0xff]  ;;  %v467_v2 = vld [vmem:[%s4249_s1 + $0x20] sm:$0xff]  ;;  %s4299_s20 = sld [smem:[#allocation20_spill]] }
  0xbe   : > { %592 = vmatprep.mubr.f32.mxu0 %v3352_v0  ;;  %v463_v3 = vld [vmem:[%s4249_s1] sm:$0xff]  ;;  %v2534_v4 = vpack.c.bf16 %v467_v2, %v464_v1  ;;  %v466_v5 = vld [vmem:[%s4249_s1 + $0x18] sm:$0xff]  ;;  %v473_v7 = vld [vmem:[%s4249_s1 + $0x50] sm:$0xff]  ;;  %vm798_vm0 = vcmask 261120   ;;  %s3353_s23 = smov 64   ;;  %s3354_s28 = smov 96  }
  0xbf   : > { %v470_v6 = vld [vmem:[%s4249_s1 + $0x38] sm:$0xff]  ;;  %v2536_v8 = vpack.c.bf16 %v466_v5, %v463_v3  ;;  %v469_v10 = vld [vmem:[%s4249_s1 + $0x30] sm:$0xff]  ;;  %v472_v11 = vld [vmem:[%s4249_s1 + $0x48] sm:$0xff]  ;;  %s3355_s2 = smov 32   ;;  %s4302_s29 = sld [smem:[#allocation18_spill]]  ;;  %vm1381_vm2 = vcmask 523264  }
  0xc0   : > { %v2538_v9 = vpack.c.bf16 %v473_v7, %v470_v6  ;;  %v476_v12 = vld [vmem:[%s4249_s1 + $0x68] sm:$0xff]  ;;  %2535 = vmatprep.subr.bf16.mxu0 %v2534_v4  ;;  %v479_v13 = vld [vmem:[%s4249_s1 + $0x80] sm:$0xff]  ;;  %v2540_v14 = vpack.c.bf16 %v472_v11, %v469_v10  ;;  %v478_v17 = vld [vmem:[%s4249_s1 + $0x78] sm:$0xff]  ;;  %v513_v11 = vlaneseq  ;;  %s4303_s17 = sld [smem:[#allocation17_spill]]  ;;  %vm1386_vm3 = vcmask 785408   ;;  %s4305_s21 = sld [smem:[#allocation24_spill]] }
  0xc1   : > { %2537 = vmatpush1.bf16.msra.mxu0 %v2536_v8  ;;  %v2542_v15 = vpack.c.bf16 %v479_v13, %v476_v12  ;;  %v475_v16 = vld [vmem:[%s4249_s1 + $0x60] sm:$0xff]  ;;  %v482_v18 = vld [vmem:[%s4249_s1 + $0x98] sm:$0xff]  ;;  %v485_v19 = vld [vmem:[%s4249_s1 + $0xb0] sm:$0xff] }
  0xc2   : > { %2539 = vmatprep.subr.bf16.mxu0 %v2538_v9  ;;  %v2544_v20 = vpack.c.bf16 %v478_v17, %v475_v16  ;;  %v2546_v21 = vpack.c.bf16 %v485_v19, %v482_v18  ;;  %v481_v22 = vld [vmem:[%s4249_s1 + $0x90] sm:$0xff]  ;;  %v484_v23 = vld [vmem:[%s4249_s1 + $0xa8] sm:$0xff]  ;;  %v491_v25 = vld [vmem:[%s4249_s1 + $0xe0] sm:$0xff]  ;;  %v3831_v12 = vshrl.u32 %v513_v11, 7 }
  0xc3   : > { %v488_v24 = vld [vmem:[%s4249_s1 + $0xc8] sm:$0xff]  ;;  %v459_v26 = vld [vmem:[%s3671_s5] sm:$0xff]  ;;  %v2548_v27 = vpack.c.bf16 %v484_v23, %v481_v22  ;;  %v490_v30 = vld [vmem:[%s4249_s1 + $0xd8] sm:$0xff] }
  0xc4   : > { %2378 = vmatprep.mubr.f32.mxu1 %v459_v26  ;;  %v2550_v28 = vpack.c.bf16 %v491_v25, %v488_v24  ;;  %v487_v29 = vld [vmem:[%s4249_s1 + $0xc0] sm:$0xff]  ;;  %v494_v31 = vld [vmem:[%s4249_s1 + $0xf8] sm:$0xff]  ;;  %v497_v32 = vld [vmem:[%s4249_s1 + $0x110] sm:$0xff]  ;;  %v3834_v13 = vsub.s32 0, %v3831_v12  ;;  %v3850_v19 = vsub.s32 1, %v3831_v12 }
  0xc5   : > { %2541 = vmatpush1.bf16.msra.mxu0 %v2540_v14  ;;  %v2552_v33 = vpack.c.bf16 %v490_v30, %v487_v29  ;;  %v2554_v34 = vpack.c.bf16 %v497_v32, %v494_v31  ;;  %v493_v35 = vld [vmem:[%s4249_s1 + $0xf0] sm:$0xff]  ;;  %v496_v36 = vld [vmem:[%s4249_s1 + $0x108] sm:$0xff]  ;;  %v503_v38 = vld [vmem:[%s4249_s1 + $0x140] sm:$0xff]  ;;  %s2155_s19 = sshll.u32 %s4302_s29, 2 }
  0xc6   : > { %2543 = vmatprep.subr.bf16.mxu0 %v2542_v15  ;;  %v500_v37 = vld [vmem:[%s4249_s1 + $0x128] sm:$0xff]  ;;  %v2556_v39 = vpack.c.bf16 %v496_v36, %v493_v35  ;;  %v499_v41 = vld [vmem:[%s4249_s1 + $0x120] sm:$0xff]  ;;  %v502_v42 = vld [vmem:[%s4249_s1 + $0x138] sm:$0xff]  ;;  %s4033_s30 = sadd.s32 %s4303_s17, %s2155_s19  ;;  %s1949_s19 = scalar_lea.sflag [#allocation4], %s3665_s8 }
  0xc7   : > { %v2558_v40 = vpack.c.bf16 %v503_v38, %v500_v37  ;;  %v506_v43 = vld [vmem:[%s4249_s1 + $0x158] sm:$0xff]  ;;  %v509_v44 = vld [vmem:[%s4249_s1 + $0x170] sm:$0xff]  ;;  %v2560_v45 = vpack.c.bf16 %v502_v42, %v499_v41  ;;  %v508_v48 = vld [vmem:[%s4249_s1 + $0x168] sm:$0xff]  ;;  %s2156_s22 = sshll.u32 %s4033_s30, 4 }
  0xc8   : > { %v2562_v46 = vpack.c.bf16 %v509_v44, %v506_v43  ;;  %v505_v47 = vld [vmem:[%s4249_s1 + $0x150] sm:$0xff]  ;;  %v460_v50 = vld [vmem:[%s3671_s5 + $0x8] sm:$0xff]  ;;  %v462_v52 = vld [vmem:[%s3671_s5 + $0x18] sm:$0xff]  ;;  %p452_p6 = scmp.lt.s32.totalorder %s2156_s22, 127 }
  0xc9   : > { %2545 = vmatpush1.bf16.msra.mxu0 %v2544_v20  ;;  %v2564_v49 = vpack.c.bf16 %v508_v48, %v505_v47  ;;  %v461_v51 = vld [vmem:[%s3671_s5 + $0x10] sm:$0xff]  ;;  %v468_v54 = vld [vmem:[%s4249_s1 + $0x28] sm:$0xff]  ;;  %v471_v55 = vld [vmem:[%s4249_s1 + $0x40] sm:$0xff] }
  0xca   : > { %2547 = vmatprep.subr.bf16.mxu0 %v2546_v21  ;;  %v465_v53 = vld [vmem:[%s4249_s1 + $0x10] sm:$0xff]  ;;  %v474_v57 = vld [vmem:[%s4249_s1 + $0x58] sm:$0xff]  ;;  %v480_v60 = vld [vmem:[%s4249_s1 + $0x88] sm:$0xff]  ;;  %s4324_s22 = smov (!%p452_p6, %s2156_s22), 127 }
  0xcb   : > { %v2566_v56 = vpack.c.bf16 %v468_v54, %v465_v53  ;;  %v2570_v58 = vpack.c.bf16 %v474_v57, %v471_v55  ;;  %v477_v59 = vld [vmem:[%s4249_s1 + $0x70] sm:$0xff]  ;;  %v483_v62 = vld [vmem:[%s4249_s1 + $0xa0] sm:$0xff]  ;;  %v486_v63 = vld [vmem:[%s4249_s1 + $0xb8] sm:$0xff]  ;;  %s2157_s13 = sshll.u32 %s4324_s22, 3 }
  0xcc   : > { %v2574_v61 = vpack.c.bf16 %v480_v60, %v477_v59  ;;  %v2578_v1 = vpack.c.bf16 %v486_v63, %v483_v62  ;;  %v489_v2 = vld [vmem:[%s4249_s1 + $0xd0] sm:$0xff]  ;;  %v492_v3 = vld [vmem:[%s4249_s1 + $0xe8] sm:$0xff]  ;;  %v495_v5 = vld [vmem:[%s4249_s1 + $0x100] sm:$0xff] }
  0xcd   : > { %2549 = vmatpush1.bf16.msra.mxu0 %v2548_v27  ;;  %2567 = vmatprep.subr.bf16.mxu1 %v2566_v56  ;;  %v2582_v4 = vpack.c.bf16 %v492_v3, %v489_v2  ;;  %v498_v6 = vld [vmem:[%s4249_s1 + $0x118] sm:$0xff]  ;;  %v501_v8 = vld [vmem:[%s4249_s1 + $0x130] sm:$0xff]  ;;  %v504_v9 = vld [vmem:[%s4249_s1 + $0x148] sm:$0xff] }
  0xce   : > { %2551 = vmatprep.subr.bf16.mxu0 %v2550_v28  ;;  %2569 = vmatpush3.bf16.msra.mxu1 %v2566_v56  ;;  %v2586_v7 = vpack.c.bf16 %v498_v6, %v495_v5  ;;  %v2590_v10 = vpack.c.bf16 %v504_v9, %v501_v8  ;;  %v3839_v14 = vld [vmem:[%s4299_s20] sm:$0x7]  ;;  %v510_v16 = vld [vmem:[%s4249_s1 + $0x178] sm:$0xff]  ;;  %vm3857_vm1 = vmpackc.low %vm798_vm0, %vm798_vm0  ;;  %s4304_s20 = sld [smem:[#allocation26_spill]] }
  0xcf   : > { %2571 = vmatprep.subr.bf16.mxu1 %v2570_v58  ;;  %v507_v15 = vld [vmem:[%s4249_s1 + $0x160] sm:$0xff]  ;;  %v516_v18 = vrot.slane %v3839_v14, %v3834_v13  ;;  %v520_v23 = vrot.slane %v3839_v14, %v3850_v19 }
  0xd0   : > { %v2594_v17 = vpack.c.bf16 %v510_v16, %v507_v15 }
  0xd1   : > { %2553 = vmatpush1.bf16.msra.mxu0 %v2552_v33 }
  0xd2   : > { %2555 = vmatprep.subr.bf16.mxu0 %v2554_v34  ;;  %2573 = vmatpush3.bf16.msra.mxu1 %v2570_v58 }
  0xd3   : > { %2575 = vmatprep.subr.bf16.mxu1 %v2574_v61 }
  0xd4   : > { %s4039_s25 = scalar_lea.vmem %s4304_s20, %s2157_s13 }
  0xd5   : > { %2557 = vmatpush1.bf16.msra.mxu0 %v2556_v39 }
  0xd6   : > { %2559 = vmatprep.subr.bf16.mxu0 %v2558_v40  ;;  %2577 = vmatpush3.bf16.msra.mxu1 %v2574_v61 }
  0xd7   : > { %2579 = vmatprep.subr.bf16.mxu1 %v2578_v1 }
  0xd9   : > { %2561 = vmatpush1.bf16.msra.mxu0 %v2560_v45 }
  0xda   : > { %2563 = vmatprep.subr.bf16.mxu0 %v2562_v46  ;;  %2581 = vmatpush3.bf16.msra.mxu1 %v2578_v1 }
  0xdb   : > { %2583 = vmatprep.subr.bf16.mxu1 %v2582_v4 }
  0xdd   : > { %2565 = vmatpush1.bf16.msra.mxu0 %v2564_v49 }
  0xde   : > { %2585 = vmatpush3.bf16.msra.mxu1 %v2582_v4 }
  0xdf   : > { %2587 = vmatprep.subr.bf16.mxu1 %v2586_v7 }
  0xe0   : > { %593 = vmatmul.mubr.f32.vlgmr.msra.gmra.mrb[0].mxu0 %v459_v26 }
  0xe1   : > { %598 = vmatprep.mubr.f32.mxu0 %v3352_v0 }
  0xe2   : > { %2589 = vmatpush3.bf16.msra.mxu1 %v2586_v7 }
  0xe3   : > { %2591 = vmatprep.subr.bf16.mxu1 %v2590_v10 }
  0xe4   : > { %599 = vmatmul.mubr.f32.gmra.mrb[2].mxu0 %v460_v50 }
  0xe5   : > { %604 = vmatprep.mubr.f32.mxu0 %v3352_v0 }
  0xe6   : > { %2593 = vmatpush3.bf16.msra.mxu1 %v2590_v10 }
  0xe7   : > { %2595 = vmatprep.subr.bf16.mxu1 %v2594_v17 }
  0xe8   : > { %605 = vmatmul.mubr.f32.gmra.mrb[4].mxu0 %v461_v51 }
  0xe9   : > { %610 = vmatprep.mubr.f32.mxu0 %v3352_v0 }
  0xea   : > { %2597 = vmatpush3.bf16.msra.mxu1 %v2594_v17 }
  0xec   : > { %611 = vmatmul.mubr.f32.gmra.mrb[6].mxu0 %v462_v52 }
  0xed   : > { %2379 = vmatmul.mubr.f32.vlgmr.msra.gmra.mrb[0].mxu1 %v460_v50 }
  0xee   : > { %2381 = vmatprep.mubr.f32.mxu1 %v461_v51 }
  0xf1   : > { %2382 = vmatmul.mubr.f32.gmra.mrb[2].mxu1 %v462_v52 }
 0x1b3   : > { %v594_v20 = vpop.f32.mrb[0].mxu0 }
 0x1b4   : > { %v595_v21 = vadd.f32 %v594_v20, %v516_v18  ;;  %v596_v22 = vpop.f32.mrb[1].mxu0 }
 0x1b5   : > { %v597_v26 = vadd.f32 %v596_v22, %v520_v23 }
 0x1b6   : > { %2416 = vmatprep.mubr.msk.f32.mxu0 %vm798_vm0, %v595_v21 }
 0x1b7   : > { %v600_v24 = vpop.f32.mrb[2].mxu0 }
 0x1b8   : > { %v602_v25 = vpop.f32.mrb[3].mxu0  ;;  %v601_v39 = vadd.f32 %v600_v24, %v516_v18 }
 0x1b9   : > { %v603_v27 = vadd.f32 %v602_v25, %v520_v23 }
 0x1bb   : > { %v606_v28 = vpop.f32.mrb[4].mxu0  ;;  %v2913_v29 = vpack.i.bf16 %v603_v27, %v597_v26  ;;  %v2598_v30 = vpack.c.bf16 %v603_v27, %v597_v26 }
 0x1bc   : > { %v608_v32 = vpop.f32.mrb[5].mxu0  ;;  %v607_v40 = vadd.f32 %v606_v28, %v516_v18 }
 0x1bd   : > { %2914 = vrot.lane.b32.xlu1 %v2913_v29, %s3353_s23  ;;  %2904 = vrot.lane.b32.xlu0 %v2913_v29, %s3354_s28  ;;  %v609_v35 = vadd.f32 %v608_v32, %v520_v23 }
 0x1be   : > { %2600 = vmatprep.subr.msk.bf16.mxu0 %vm3857_vm1, %v2598_v30 }
 0x1bf   : > { %2603 = vmatpush3.bf16.xpose.msk.msra.mxu0 %vm3857_vm1, %v2598_v30  ;;  %v612_v33 = vpop.f32.mrb[6].mxu0 }
 0x1c0   : > { %v614_v34 = vpop.f32.mrb[7].mxu0  ;;  %v613_v41 = vadd.f32 %v612_v33, %v516_v18  ;;  %v523_v18 = vsub.s32 2, %v3831_v12 }
 0x1c1   : > { %v615_v36 = vadd.f32 %v614_v34, %v520_v23 }
 0x1c2   : > { %v524_v20 = vrot.slane %v3839_v14, %v523_v18 }
 0x1c3   : > { %v2918_v37 = vpack.i.bf16 %v615_v36, %v609_v35  ;;  %v2604_v38 = vpack.c.bf16 %v615_v36, %v609_v35 }
 0x1c5   : > { %2919 = vrot.lane.b32.xlu1 %v2918_v37, %s3353_s23  ;;  %2909 = vrot.lane.b32.xlu0 %v2918_v37, %s3354_s28 }
 0x1c6   : > { %2606 = vmatprep.subr.msk.bf16.mxu0 %vm3857_vm1, %v2604_v38 }
 0x1c7   : > { %2609 = vmatpush3.bf16.xpose.msk.msra.mxu0 %vm3857_vm1, %v2604_v38 }
 0x1c9   : > { %2929 = vrot.lane.b32.xlu1 %v2918_v37, %s3355_s2  ;;  %2924 = vrot.lane.b32.xlu0 %v2913_v29, %s3355_s2 }
 0x1cd   : > { %708 = vrot.lane.b32.xlu1 %v601_v39, %s3354_s28  ;;  %706 = vrot.lane.b32.xlu0 %v595_v21, %s3354_s28 }
 0x1d1   : > { %712 = vrot.lane.b32.xlu1 %v613_v41, %s3354_s28  ;;  %710 = vrot.lane.b32.xlu0 %v607_v40, %s3354_s28 }
 0x1d5   : > { %716 = vrot.lane.b32.xlu1 %v601_v39, %s3353_s23  ;;  %714 = vrot.lane.b32.xlu0 %v595_v21, %s3353_s23 }
 0x1d9   : > { %720 = vrot.lane.b32.xlu1 %v613_v41, %s3353_s23  ;;  %718 = vrot.lane.b32.xlu0 %v607_v40, %s3353_s23 }
 0x1dd   : > { %724 = vrot.lane.b32.xlu1 %v601_v39, %s3355_s2  ;;  %722 = vrot.lane.b32.xlu0 %v595_v21, %s3355_s2  ;;  %v2380_v21 = vpop.f32.mrb[0].mxu1 }
 0x1de   : > { %v689_v22 = vadd.f32 %v2380_v21, %v524_v20  ;;  %v683_v23 = vpop.f32.mrb[1].mxu1 }
 0x1df   : > { %v684_v24 = vadd.f32 %v683_v23, %v524_v20  ;;  %v2383_v25 = vpop.f32.mrb[2].mxu1 }
 0x1e0   : > { %v699_v28 = vadd.f32 %v2383_v25, %v524_v20  ;;  %v693_v29 = vpop.f32.mrb[3].mxu1 }
 0x1e1   : > { %728 = vrot.lane.b32.xlu1 %v613_v41, %s3355_s2  ;;  %726 = vrot.lane.b32.xlu0 %v607_v40, %s3355_s2  ;;  %v3931_v26 = vpack.i.bf16 %v689_v22, %v684_v24  ;;  %v2646_v27 = vpack.c.bf16 %v689_v22, %v684_v24  ;;  %v694_v30 = vadd.f32 %v693_v29, %v524_v20 }
 0x1e3   : > { %2647 = vmatprep.subr.bf16.mxu1 %v2646_v27  ;;  %v3935_v31 = vpack.i.bf16 %v699_v28, %v694_v30  ;;  %v2650_v32 = vpack.c.bf16 %v699_v28, %v694_v30 }
 0x1e4   : > { %2649 = vmatpush3.bf16.msra.mxu1 %v2646_v27 }
 0x1e5   : > { %2934 = vrot.lane.b32.xlu1 %v3931_v26, %s3354_s28  ;;  %2939 = vrot.lane.b32.xlu0 %v3935_v31, %s3354_s28 }
 0x1e6   : > { %2651 = vmatprep.subr.bf16.mxu1 %v2650_v32 }
 0x1e8   : > { %2653 = vmatpush3.bf16.msra.mxu1 %v2650_v32 }
 0x1e9   : > { %2944 = vrot.lane.b32.xlu1 %v3931_v26, %s3353_s23 }
 0x22f   : > { %v2905_v42 = vpop.permute.xlu0 %2904  ;;  %v2915_v46 = vpop.permute.xlu1 %2914 }
 0x230   : > { %v2907_v43 = vunpack.i.h.bf16 %v2905_v42  ;;  %v2906_v44 = vunpack.i.l.bf16 %v2905_v42  ;;  %v2917_v48 = vunpack.i.h.bf16 %v2915_v46  ;;  %v2916_v49 = vunpack.i.l.bf16 %v2915_v46 }
 0x232   : > { %v2610_v45 = vpack.c.bf16 %v2907_v43, %v2906_v44  ;;  %v2622_v53 = vpack.c.bf16 %v2917_v48, %v2916_v49 }
 0x234   : > { %2612 = vmatprep.subr.msk.bf16.mxu0 %vm3857_vm1, %v2610_v45 }
 0x235   : > { %2615 = vmatpush3.bf16.xpose.msk.msra.mxu0 %vm3857_vm1, %v2610_v45 }
 0x237   : > { %v2910_v47 = vpop.permute.xlu0 %2909  ;;  %v2920_v54 = vpop.permute.xlu1 %2919 }
 0x238   : > { %v2912_v50 = vunpack.i.h.bf16 %v2910_v47  ;;  %v2911_v51 = vunpack.i.l.bf16 %v2910_v47  ;;  %v2922_v55 = vunpack.i.h.bf16 %v2920_v54  ;;  %v2921_v56 = vunpack.i.l.bf16 %v2920_v54 }
 0x23a   : > { %v2616_v52 = vpack.c.bf16 %v2912_v50, %v2911_v51  ;;  %v2628_v57 = vpack.c.bf16 %v2922_v55, %v2921_v56 }
 0x23b   : > { %v2925_v58 = vpop.permute.xlu0 %2924  ;;  %v2930_v62 = vpop.permute.xlu1 %2929 }
 0x23c   : > { %2618 = vmatprep.subr.msk.bf16.mxu0 %vm3857_vm1, %v2616_v52  ;;  %v2927_v59 = vunpack.i.h.bf16 %v2925_v58  ;;  %v2926_v60 = vunpack.i.l.bf16 %v2925_v58  ;;  %v2932_v63 = vunpack.i.h.bf16 %v2930_v62  ;;  %v2931_v1 = vunpack.i.l.bf16 %v2930_v62 }
 0x23d   : > { %2621 = vmatpush3.bf16.xpose.msk.msra.mxu0 %vm3857_vm1, %v2616_v52 }
 0x23e   : > { %2624 = vmatprep.subr.msk.bf16.mxu0 %vm3857_vm1, %v2622_v53  ;;  %v2634_v61 = vpack.c.bf16 %v2927_v59, %v2926_v60  ;;  %v2640_v2 = vpack.c.bf16 %v2932_v63, %v2931_v1 }
 0x23f   : > { %v707_v3 = vpop.permute.xlu0 %706  ;;  %v709_v4 = vpop.permute.xlu1 %708 }
 0x243   : > { %v711_v5 = vpop.permute.xlu0 %710  ;;  %v713_v6 = vpop.permute.xlu1 %712 }
 0x245   : > { %2627 = vmatpush3.bf16.xpose.msk.msra.mxu0 %vm3857_vm1, %v2622_v53 }
 0x246   : > { %2630 = vmatprep.subr.msk.bf16.mxu0 %vm3857_vm1, %v2628_v57 }
 0x247   : > { %v715_v7 = vpop.permute.xlu0 %714  ;;  %v717_v8 = vpop.permute.xlu1 %716 }
 0x24b   : > { %v719_v9 = vpop.permute.xlu0 %718  ;;  %v721_v10 = vpop.permute.xlu1 %720 }
 0x24d   : > { %2633 = vmatpush3.bf16.xpose.msk.msra.mxu0 %vm3857_vm1, %v2628_v57 }
 0x24e   : > { %2636 = vmatprep.subr.msk.bf16.mxu0 %vm3857_vm1, %v2634_v61 }
 0x24f   : > { %v723_v11 = vpop.permute.xlu0 %722  ;;  %v725_v15 = vpop.permute.xlu1 %724 }
 0x253   : > { %v727_v16 = vpop.permute.xlu0 %726  ;;  %v729_v17 = vpop.permute.xlu1 %728 }
 0x255   : > { %2639 = vmatpush3.bf16.xpose.msk.msra.mxu0 %vm3857_vm1, %v2634_v61 }
 0x256   : > { %2642 = vmatprep.subr.msk.bf16.mxu0 %vm3857_vm1, %v2640_v2 }
 0x257   : > { %v2935_v14 = vpop.permute.xlu1 %2934  ;;  %v2940_v36 = vpop.permute.xlu0 %2939 }
 0x258   : > { %v2937_v33 = vunpack.i.h.bf16 %v2935_v14  ;;  %v2936_v34 = vunpack.i.l.bf16 %v2935_v14  ;;  %v2942_v38 = vunpack.i.h.bf16 %v2940_v36 }
 0x25a   : > { %v2654_v35 = vpack.c.bf16 %v2937_v33, %v2936_v34 }
 0x25b   : > { %v2945_v37 = vpop.permute.xlu1 %2944 }
 0x25c   : > { %2655 = vmatprep.subr.bf16.mxu1 %v2654_v35 }
 0x25d   : > { %2645 = vmatpush3.bf16.xpose.msk.msra.mxu0 %vm3857_vm1, %v2640_v2  ;;  %2657 = vmatpush3.bf16.msra.mxu1 %v2654_v35 }
 0x264   : > { %2417 = vmatmul.mubr.msk.f32.vlgmr.msra.gmra.mrb[8].mxu0 %vm798_vm0, %v601_v39  ;;  %v2941_v39 = vunpack.i.l.bf16 %v2940_v36 }
 0x265   : > { %2419 = vmatprep.mubr.msk.f32.mxu0 %vm798_vm0, %v607_v40  ;;  %v2947_v40 = vunpack.i.h.bf16 %v2945_v37 }
 0x266   : > { %v2658_v42 = vpack.c.bf16 %v2942_v38, %v2941_v39 }
 0x268   : > { %2420 = vmatmul.mubr.msk.f32.gmra.mrb[10].mxu0 %vm798_vm0, %v613_v41  ;;  %v2946_v41 = vunpack.i.l.bf16 %v2945_v37  ;;  %2659 = vmatprep.subr.bf16.mxu1 %v2658_v42 }
 0x269   : > { %2422 = vmatprep.mubr.msk.f32.mxu0 %vm798_vm0, %v707_v3  ;;  %2661 = vmatpush3.bf16.msra.mxu1 %v2658_v42 }
 0x26a   : > { %v2662_v43 = vpack.c.bf16 %v2947_v40, %v2946_v41 }
 0x26c   : > { %2423 = vmatmul.mubr.msk.f32.gmra.mrb[12].mxu0 %vm798_vm0, %v709_v4  ;;  %2663 = vmatprep.subr.bf16.mxu1 %v2662_v43 }
 0x26d   : > { %2425 = vmatprep.mubr.msk.f32.mxu0 %vm798_vm0, %v711_v5  ;;  %2665 = vmatpush3.bf16.msra.mxu1 %v2662_v43 }
 0x270   : > { %2426 = vmatmul.mubr.msk.f32.gmra.mrb[14].mxu0 %vm798_vm0, %v713_v6 }
 0x271   : > { %2428 = vmatprep.mubr.msk.f32.mxu0 %vm798_vm0, %v715_v7 }
 0x274   : > { %2429 = vmatmul.mubr.msk.f32.gmra.mrb[16].mxu0 %vm798_vm0, %v717_v8 }
 0x275   : > { %2431 = vmatprep.mubr.msk.f32.mxu0 %vm798_vm0, %v719_v9 }
 0x278   : > { %2432 = vmatmul.mubr.msk.f32.gmra.mrb[18].mxu0 %vm798_vm0, %v721_v10 }
 0x279   : > { %2434 = vmatprep.mubr.msk.f32.mxu0 %vm798_vm0, %v723_v11 }
 0x27c   : > { %2435 = vmatmul.mubr.msk.f32.gmra.mrb[20].mxu0 %vm798_vm0, %v725_v15 }
 0x27d   : > { %2437 = vmatprep.mubr.msk.f32.mxu0 %vm798_vm0, %v727_v16 }
 0x280   : > { %2438 = vmatmul.mubr.msk.f32.gmra.mrb[22].mxu0 %vm798_vm0, %v729_v17 }
 0x281   : > { %1698 = vmatprep.mubr.f32.mxu0 %v3352_v0 }
 0x337   : > { %v2418_v44 = vpop.f32.mrb[8].mxu0 }
 0x338   : > { %v1009_v45 = vmul.f32 0.17677669, %v2418_v44  ;;  %v929_v46 = vpop.f32.mrb[9].mxu0 }
 0x339   : > { %v1008_v47 = vmul.f32 0.17677669, %v929_v46 }
 0x33a   : > { %1026 = vmax.xlane.f32.xlu1 %v1009_v45 }
 0x33b   : > { %1024 = vmax.xlane.f32.xlu0 %v1008_v47  ;;  %v2421_v48 = vpop.f32.mrb[10].mxu0 }
 0x33c   : > { %v1011_v49 = vmul.f32 0.17677669, %v2421_v48  ;;  %v939_v50 = vpop.f32.mrb[11].mxu0 }
 0x33d   : > { %v1010_v53 = vmul.f32 0.17677669, %v939_v50 }
 0x33f   : > { %1030 = vmax.xlane.f32.xlu0 %v1011_v49  ;;  %v2424_v51 = vpop.f32.mrb[12].mxu0 }
 0x340   : > { %v949_v52 = vpop.f32.mrb[13].mxu0  ;;  %v1013_v57 = vmul.f32 0.17677669, %v2424_v51 }
 0x341   : > { %v1012_v54 = vmul.f32 0.17677669, %v949_v52 }
 0x343   : > { %1028 = vmax.xlane.f32.xlu0 %v1010_v53  ;;  %1032 = vmax.xlane.f32.xlu1 %v1012_v54  ;;  %v2427_v55 = vpop.f32.mrb[14].mxu0 }
 0x344   : > { %v959_v56 = vpop.f32.mrb[15].mxu0  ;;  %v1015_v61 = vmul.f32 0.17677669, %v2427_v55 }
 0x345   : > { %v3941_v58 = vmul.f32 0.17677669, %v959_v56 }
 0x347   : > { %1034 = vmax.xlane.f32.xlu0 %v1013_v57  ;;  %1036 = vmax.xlane.f32.xlu1 %v3941_v58  ;;  %v2430_v59 = vpop.f32.mrb[16].mxu0 }
 0x348   : > { %v969_v60 = vpop.f32.mrb[17].mxu0  ;;  %v3947_v2 = vmul.f32 0.17677669, %v2430_v59 }
 0x349   : > { %v3944_v62 = vmul.f32 0.17677669, %v969_v60 }
 0x34b   : > { %1038 = vmax.xlane.f32.xlu0 %v1015_v61  ;;  %1040 = vmax.xlane.f32.xlu1 %v3944_v62  ;;  %v2433_v63 = vpop.f32.mrb[18].mxu0 }
 0x34c   : > { %v979_v1 = vpop.f32.mrb[19].mxu0  ;;  %v3953_v6 = vmul.f32 0.17677669, %v2433_v63 }
 0x34d   : > { %v3949_v3 = vmul.f32 0.17677669, %v979_v1 }
 0x34f   : > { %1042 = vmax.xlane.f32.xlu0 %v3947_v2  ;;  %1044 = vmax.xlane.f32.xlu1 %v3949_v3  ;;  %v2436_v4 = vpop.f32.mrb[20].mxu0 }
 0x350   : > { %v989_v5 = vpop.f32.mrb[21].mxu0  ;;  %v3959_v10 = vmul.f32 0.17677669, %v2436_v4 }
 0x351   : > { %v3955_v7 = vmul.f32 0.17677669, %v989_v5 }
 0x353   : > { %1046 = vmax.xlane.f32.xlu0 %v3953_v6  ;;  %1048 = vmax.xlane.f32.xlu1 %v3955_v7  ;;  %v2439_v8 = vpop.f32.mrb[22].mxu0 }
 0x354   : > { %v999_v9 = vpop.f32.mrb[23].mxu0  ;;  %v3965_v15 = vmul.f32 0.17677669, %v2439_v8 }
 0x355   : > { %v3961_v11 = vmul.f32 0.17677669, %v999_v9 }
 0x357   : > { %1050 = vmax.xlane.f32.xlu0 %v3959_v10  ;;  %1052 = vmax.xlane.f32.xlu1 %v3961_v11 }
 0x35b   : > { %1054 = vmax.xlane.f32.xlu0 %v3965_v15 }
 0x368   : > { %2949 = vrot.lane.b32.xlu1 %v3935_v31, %s3353_s23 }
 0x371   : > { %2954 = vrot.lane.b32.xlu0 %v3931_v26, %s3355_s2 }
 0x3c7   : > { %v1027_v16 = vpop.xlane.xlu1 %1026 }
 0x3c8   : > { %v1057_v17 = vsub.f32 %v1009_v45, %v1027_v16  ;;  %v1025_v20 = vpop.xlane.xlu0 %1024 }
 0x3c9   : > { %v1056_v21 = vsub.f32 %v1008_v47, %v1025_v20 }
 0x3ca   : > { %v1074_v22 = vmul.f32 1.442695, %v1057_v17 }
 0x3cb   : > { %v1072_v23 = vmul.f32 1.442695, %v1056_v21 }
 0x3cc   : > { %2993 = vpow2.f32 %v1074_v22  ;;  %v1031_v24 = vpop.xlane.xlu0 %1030 }
 0x3cd   : > { %2995 = vpow2.f32 %v1072_v23  ;;  %v1059_v25 = vsub.f32 %v1011_v49, %v1031_v24 }
 0x3cf   : > { %v1078_v27 = vmul.f32 1.442695, %v1059_v25 }
 0x3d0   : > { %v1029_v28 = vpop.xlane.xlu0 %1028  ;;  %v1033_v29 = vpop.xlane.xlu1 %1032 }
 0x3d1   : > { %2997 = vpow2.f32 %v1078_v27  ;;  %v1058_v30 = vsub.f32 %v1010_v53, %v1029_v28  ;;  %v1060_v32 = vsub.f32 %v1012_v54, %v1033_v29 }
 0x3d3   : > { %v1076_v14 = vmul.f32 1.442695, %v1058_v30  ;;  %v1080_v33 = vmul.f32 1.442695, %v1060_v32 }
 0x3d4   : > { %v1035_v34 = vpop.xlane.xlu0 %1034  ;;  %v1037_v26 = vpop.xlane.xlu1 %1036 }
 0x3d5   : > { %2999 = vpow2.f32 %v1076_v14  ;;  %v1061_v35 = vsub.f32 %v1013_v57, %v1035_v34  ;;  %v1062_v41 = vsub.f32 %v3941_v58, %v1037_v26 }
 0x3d6   : > { %v3972_v36 = vpop.eup %2993  ;;  %3001 = vpow2.f32 %v1080_v33 }
 0x3d7   : > { %v3974_v37 = vpop.eup %2995  ;;  %v1082_v38 = vmul.f32 1.442695, %v1061_v35  ;;  %1106 = vadd.xlane.f32.xlu0 %v3972_v36  ;;  %v1084_v47 = vmul.f32 1.442695, %v1062_v41 }
 0x3d8   : > { %v1039_v39 = vpop.xlane.xlu0 %1038  ;;  %v1041_v40 = vpop.xlane.xlu1 %1040  ;;  %1104 = vadd.xlane.f32.xlu1 %v3974_v37 }
 0x3d9   : > { %3003 = vpow2.f32 %v1082_v38  ;;  %v1063_v42 = vsub.f32 %v1015_v61, %v1039_v39  ;;  %v1064_v48 = vsub.f32 %v3944_v62, %v1041_v40 }
 0x3db   : > { %v3979_v43 = vpop.eup %2997  ;;  %v1086_v44 = vmul.f32 1.442695, %v1063_v42  ;;  %v1088_v53 = vmul.f32 1.442695, %v1064_v48 }
 0x3dc   : > { %v1043_v45 = vpop.xlane.xlu0 %1042  ;;  %v1045_v46 = vpop.xlane.xlu1 %1044  ;;  %1110 = vadd.xlane.f32.xlu0 %v3979_v43 }
 0x3dd   : > { %3005 = vpow2.f32 %v1086_v44  ;;  %v1066_v54 = vsub.f32 %v3949_v3, %v1045_v46 }
 0x3de   : > { %3007 = vpow2.f32 %v1084_v47 }
 0x3df   : > { %v3983_v49 = vpop.eup %2999  ;;  %3009 = vpow2.f32 %v1088_v53  ;;  %v1092_v59 = vmul.f32 1.442695, %v1066_v54 }
 0x3e0   : > { %v3985_v50 = vpop.eup %3001  ;;  %v1047_v51 = vpop.xlane.xlu0 %1046  ;;  %1108 = vadd.xlane.f32.xlu0 %v3983_v49 }
 0x3e1   : > { %v1049_v52 = vpop.xlane.xlu1 %1048  ;;  %1112 = vadd.xlane.f32.xlu1 %v3985_v50  ;;  %3011 = vpow2.f32 %v1092_v59  ;;  %v1067_v28 = vsub.f32 %v3953_v6, %v1047_v51 }
 0x3e2   : > { %v1068_v56 = vsub.f32 %v3955_v7, %v1049_v52 }
 0x3e3   : > { %v3990_v55 = vpop.eup %3003  ;;  %v1094_v29 = vmul.f32 1.442695, %v1067_v28 }
 0x3e4   : > { %v1051_v57 = vpop.xlane.xlu0 %1050  ;;  %1114 = vadd.xlane.f32.xlu0 %v3990_v55  ;;  %v1096_v61 = vmul.f32 1.442695, %v1068_v56 }
 0x3e5   : > { %v1053_v58 = vpop.xlane.xlu1 %1052  ;;  %v1069_v30 = vsub.f32 %v3959_v10, %v1051_v57 }
 0x3e6   : > { %v1070_v1 = vsub.f32 %v3961_v11, %v1053_v58  ;;  %3013 = vpow2.f32 %v1096_v61 }
 0x3e7   : > { %v3994_v60 = vpop.eup %3005  ;;  %v1098_v32 = vmul.f32 1.442695, %v1069_v30 }
 0x3e8   : > { %1118 = vadd.xlane.f32.xlu0 %v3994_v60  ;;  %v1055_v62 = vpop.xlane.xlu0 %1054  ;;  %v3998_v5 = vpop.eup %3007  ;;  %v1100_v9 = vmul.f32 1.442695, %v1070_v1 }
 0x3e9   : > { %v2950_v63 = vpop.permute.xlu1 %2949  ;;  %v1071_v16 = vsub.f32 %v3965_v15, %v1055_v62  ;;  %v4002_v21 = vpop.eup %3009 }
 0x3ea   : > { %v2952_v3 = vunpack.i.h.bf16 %v2950_v63  ;;  %v2951_v4 = vunpack.i.l.bf16 %v2950_v63  ;;  %3015 = vpow2.f32 %v1100_v9 }
 0x3eb   : > { %v1102_v11 = vmul.f32 1.442695, %v1071_v16  ;;  %v4007_v23 = vpop.eup %3011 }
 0x3ec   : > { %v2666_v7 = vpack.c.bf16 %v2952_v3, %v2951_v4  ;;  %1116 = vadd.xlane.f32.xlu0 %v3998_v5  ;;  %v2955_v8 = vpop.permute.xlu0 %2954 }
 0x3ed   : > { %v2957_v17 = vunpack.i.h.bf16 %v2955_v8  ;;  %v2956_v20 = vunpack.i.l.bf16 %v2955_v8  ;;  %3017 = vpow2.f32 %v1102_v11 }
 0x3ee   : > { %2667 = vmatprep.subr.bf16.mxu1 %v2666_v7 }
 0x3ef   : > { %2669 = vmatpush3.bf16.msra.mxu1 %v2666_v7  ;;  %v2670_v22 = vpack.c.bf16 %v2957_v17, %v2956_v20 }
 0x3f0   : > { %1120 = vadd.xlane.f32.xlu0 %v4002_v21  ;;  %v4010_v15 = vpop.eup %3013 }
 0x3f1   : > { %2671 = vmatprep.subr.bf16.mxu1 %v2670_v22 }
 0x3f2   : > { %2959 = vrot.lane.b32.xlu1 %v3935_v31, %s3355_s2  ;;  %v1065_v31 = vsub.f32 %v3947_v2, %v1043_v45 }
 0x3f3   : > { %2673 = vmatpush3.bf16.msra.mxu1 %v2670_v22 }
 0x3f4   : > { %1124 = vadd.xlane.f32.xlu0 %v4007_v23  ;;  %v4013_v24 = vpop.eup %3015  ;;  %v1090_v27 = vmul.f32 1.442695, %v1065_v31 }
 0x3f6   : > { %3019 = vpow2.f32 %v1090_v27 }
 0x3f7   : > { %v4016_v25 = vpop.eup %3017  ;;  %3021 = vpow2.f32 %v1094_v29 }
 0x3f8   : > { %1128 = vadd.xlane.f32.xlu0 %v4010_v15  ;;  %3023 = vpow2.f32 %v1098_v32  ;;  %v1392_v32 = vld [vmem:[#allocation5] sm:$0xff] }
 0x3fc   : > { %1132 = vadd.xlane.f32.xlu0 %v4013_v24 }
 0x400   : > { %1134 = vadd.xlane.f32.xlu0 %v4016_v25  ;;  %v4022_v14 = vpop.eup %3019 }
 0x401   : > { %v4025_v33 = vpop.eup %3021 }
 0x402   : > { %v4028_v2 = vpop.eup %3023 }
 0x416   : > { %1122 = vadd.xlane.f32.xlu1 %v4022_v14 }
 0x41a   : > { %1126 = vadd.xlane.f32.xlu1 %v4025_v33 }
 0x41e   : > { %1130 = vadd.xlane.f32.xlu1 %v4028_v2 }
 0x464   : > { %v1107_v6 = vpop.xlane.xlu0 %1106 }
 0x465   : > { %3025 = vrcp.f32 %v1107_v6  ;;  %v1105_v10 = vpop.xlane.xlu1 %1104  ;;  %v1394_v6 = vld [vmem:[#allocation5 + $0x10] sm:$0xff] }
 0x466   : > { %3027 = vrcp.f32 %v1105_v10 }
 0x469   : > { %v1111_v34 = vpop.xlane.xlu0 %1110 }
 0x46a   : > { %3029 = vrcp.f32 %v1111_v34  ;;  %v1395_v34 = vld [vmem:[#allocation5 + $0x18] sm:$0xff] }
 0x46d   : > { %v1109_v26 = vpop.xlane.xlu0 %1108 }
 0x46e   : > { %3031 = vrcp.f32 %v1109_v26  ;;  %v1113_v35 = vpop.xlane.xlu1 %1112  ;;  %v2682_v26 = vpack.c.bf16 %v1395_v34, %v1394_v6 }
 0x46f   : > { %v3026_v38 = vpop.eup %3025  ;;  %3033 = vrcp.f32 %v1113_v35  ;;  %v1396_v35 = vld [vmem:[#allocation5 + $0x20] sm:$0xff] }
 0x470   : > { %v3028_v39 = vpop.eup %3027  ;;  %v1153_v40 = vmul.f32 %v3026_v38, %v3972_v36 }
 0x471   : > { %v1115_v41 = vpop.xlane.xlu0 %1114  ;;  %v1152_v42 = vmul.f32 %v3028_v39, %v3974_v37 }
 0x472   : > { %1169 = vst [vmem:[%s4039_s25 + $0x8] sm:$0xff] %v1153_v40  ;;  %3035 = vrcp.f32 %v1115_v41  ;;  %v2960_v44 = vpop.permute.xlu1 %2959 }
 0x473   : > { %v2962_v45 = vunpack.i.h.bf16 %v2960_v44  ;;  %v2961_v46 = vunpack.i.l.bf16 %v2960_v44  ;;  %1168 = vst [vmem:[%s4039_s25] sm:$0xff] %v1152_v42  ;;  %2472 = vmatprep.mubr.f32.mxu1 %v1152_v42  ;;  %v1398_v42 = vld [vmem:[#allocation5 + $0x30] sm:$0xff]  ;;  %v1399_v44 = vld [vmem:[#allocation5 + $0x38] sm:$0xff] }
 0x474   : > { %v3030_v47 = vpop.eup %3029 }
 0x475   : > { %v2674_v48 = vpack.c.bf16 %v2962_v45, %v2961_v46  ;;  %v1119_v51 = vpop.xlane.xlu0 %1118  ;;  %v1155_v52 = vmul.f32 %v3030_v47, %v3979_v43  ;;  %v2690_v46 = vpack.c.bf16 %v1399_v44, %v1398_v42 }
 0x476   : > { %3037 = vrcp.f32 %v1119_v51  ;;  %v1401_v51 = vld [vmem:[#allocation5 + $0x48] sm:$0xff] }
 0x477   : > { %2675 = vmatprep.subr.bf16.mxu1 %v2674_v48  ;;  %1171 = vst [vmem:[%s4039_s25 + $0x18] sm:$0xff] %v1155_v52 }
 0x478   : > { %v3032_v36 = vpop.eup %3031  ;;  %2677 = vmatpush3.bf16.msra.mxu1 %v2674_v48  ;;  %v1400_v48 = vld [vmem:[#allocation5 + $0x40] sm:$0xff] }
 0x479   : > { %v3034_v37 = vpop.eup %3033  ;;  %v1117_v53 = vpop.xlane.xlu0 %1116  ;;  %v1154_v54 = vmul.f32 %v3032_v36, %v3983_v49  ;;  %v2694_v36 = vpack.c.bf16 %v1401_v51, %v1400_v48 }
 0x47a   : > { %3039 = vrcp.f32 %v1117_v53  ;;  %v1156_v56 = vmul.f32 %v3034_v37, %v3985_v50  ;;  %v1402_v37 = vld [vmem:[#allocation5 + $0x50] sm:$0xff]  ;;  %v1403_v53 = vld [vmem:[#allocation5 + $0x58] sm:$0xff] }
 0x47b   : > { %2473 = vmatmul.mubr.f32.vlgmr.msra.gmra.mrb[4].mxu1 %v1153_v40  ;;  %1170 = vst [vmem:[%s4039_s25 + $0x10] sm:$0xff] %v1154_v54 }
 0x47c   : > { %v3036_v57 = vpop.eup %3035  ;;  %2475 = vmatprep.mubr.f32.mxu1 %v1154_v54  ;;  %1172 = vst [vmem:[%s4039_s25 + $0x20] sm:$0xff] %v1156_v56  ;;  %v2698_v54 = vpack.c.bf16 %v1403_v53, %v1402_v37  ;;  %v3090_v37 = vld [vmem:[%s3671_s5] sm:$0xff] }
 0x47d   : > { %v1121_v43 = vpop.xlane.xlu0 %1120  ;;  %v1157_v58 = vmul.f32 %v3036_v57, %v3990_v55  ;;  %v1405_v57 = vld [vmem:[#allocation5 + $0x68] sm:$0xff] }
 0x47e   : > { %3041 = vrcp.f32 %v1121_v43 }
 0x47f   : > { %2476 = vmatmul.mubr.f32.gmra.mrb[6].mxu1 %v1155_v52  ;;  %1173 = vst [vmem:[%s4039_s25 + $0x28] sm:$0xff] %v1157_v58 }
 0x480   : > { %v3038_v59 = vpop.eup %3037  ;;  %2478 = vmatprep.mubr.f32.mxu1 %v1156_v56  ;;  %v1404_v56 = vld [vmem:[#allocation5 + $0x60] sm:$0xff] }
 0x481   : > { %v1125_v61 = vpop.xlane.xlu0 %1124  ;;  %v1159_v49 = vmul.f32 %v3038_v59, %v3994_v60  ;;  %v2702_v43 = vpack.c.bf16 %v1405_v57, %v1404_v56  ;;  %v1407_v59 = vld [vmem:[#allocation5 + $0x78] sm:$0xff] }
 0x482   : > { %3043 = vrcp.f32 %v1125_v61 }
 0x483   : > { %2479 = vmatmul.mubr.f32.gmra.mrb[8].mxu1 %v1157_v58  ;;  %1175 = vst [vmem:[%s4039_s25 + $0x38] sm:$0xff] %v1159_v49  ;;  %v1406_v58 = vld [vmem:[#allocation5 + $0x70] sm:$0xff] }
 0x484   : > { %v3040_v50 = vpop.eup %3039  ;;  %v2706_v61 = vpack.c.bf16 %v1407_v59, %v1406_v58  ;;  %v3091_v58 = vld [vmem:[%s3671_s5 + $0x10] sm:$0xff] }
 0x485   : > { %v1129_v62 = vpop.xlane.xlu0 %1128  ;;  %v1158_v63 = vmul.f32 %v3040_v50, %v3998_v5 }
 0x486   : > { %3045 = vrcp.f32 %v1129_v62 }
 0x487   : > { %1174 = vst [vmem:[%s4039_s25 + $0x30] sm:$0xff] %v1158_v63  ;;  %2481 = vmatprep.mubr.f32.mxu1 %v1158_v63 }
 0x488   : > { %v3042_v55 = vpop.eup %3041  ;;  %2482 = vmatmul.mubr.f32.gmra.mrb[10].mxu1 %v1159_v49 }
 0x489   : > { %v1133_v1 = vpop.xlane.xlu0 %1132  ;;  %v1160_v3 = vmul.f32 %v3042_v55, %v4002_v21 }
 0x48a   : > { %3047 = vrcp.f32 %v1133_v1 }
 0x48b   : > { %1176 = vst [vmem:[%s4039_s25 + $0x40] sm:$0xff] %v1160_v3  ;;  %2484 = vmatprep.mubr.f32.mxu1 %v1160_v3 }
 0x48c   : > { %v3044_v60 = vpop.eup %3043 }
 0x48d   : > { %v1135_v4 = vpop.xlane.xlu0 %1134  ;;  %v1162_v7 = vmul.f32 %v3044_v60, %v4007_v23 }
 0x48e   : > { %3049 = vrcp.f32 %v1135_v4 }
 0x48f   : > { %1178 = vst [vmem:[%s4039_s25 + $0x50] sm:$0xff] %v1162_v7 }
 0x490   : > { %v3046_v5 = vpop.eup %3045 }
 0x491   : > { %v1164_v8 = vmul.f32 %v3046_v5, %v4010_v15 }
 0x493   : > { %1180 = vst [vmem:[%s4039_s25 + $0x60] sm:$0xff] %v1164_v8 }
 0x494   : > { %v3048_v9 = vpop.eup %3047 }
 0x495   : > { %v1166_v16 = vmul.f32 %v3048_v9, %v4013_v24 }
 0x497   : > { %1182 = vst [vmem:[%s4039_s25 + $0x70] sm:$0xff] %v1166_v16 }
 0x498   : > { %v3050_v17 = vpop.eup %3049 }
 0x499   : > { %v1167_v20 = vmul.f32 %v3050_v17, %v4016_v25 }
 0x49b   : > { %1183 = vst [vmem:[%s4039_s25 + $0x78] sm:$0xff] %v1167_v20 }
 0x4a3   : > { %v1123_v21 = vpop.xlane.xlu1 %1122 }
 0x4a4   : > { %3051 = vrcp.f32 %v1123_v21 }
 0x4a7   : > { %v1127_v22 = vpop.xlane.xlu1 %1126 }
 0x4a8   : > { %3053 = vrcp.f32 %v1127_v22 }
 0x4ab   : > { %v1131_v11 = vpop.xlane.xlu1 %1130 }
 0x4ac   : > { %3055 = vrcp.f32 %v1131_v11 }
 0x4ae   : > { %v3052_v23 = vpop.eup %3051 }
 0x4af   : > { %v1161_v15 = vmul.f32 %v3052_v23, %v4022_v14  ;;  %v1393_v14 = vld [vmem:[#allocation5 + $0x8] sm:$0xff] }
 0x4b0   : > { %v2678_v10 = vpack.c.bf16 %v1393_v14, %v1392_v32 }
 0x4b1   : > { %1177 = vst [vmem:[%s4039_s25 + $0x48] sm:$0xff] %v1161_v15  ;;  %2485 = vmatmul.mubr.f32.gmra.mrb[12].mxu1 %v1161_v15 }
 0x4b2   : > { %v3054_v31 = vpop.eup %3053  ;;  %2487 = vmatprep.mubr.f32.mxu1 %v1162_v7  ;;  %2679 = vmatprep.subr.bf16.mxu1 %v2678_v10 }
 0x4b3   : > { %v1163_v24 = vmul.f32 %v3054_v31, %v4025_v33  ;;  %2681 = vmatpush3.bf16.msra.mxu1 %v2678_v10 }
 0x4b4   : > { %2683 = vmatprep.subr.bf16.mxu1 %v2682_v26 }
 0x4b5   : > { %1179 = vst [vmem:[%s4039_s25 + $0x58] sm:$0xff] %v1163_v24  ;;  %2488 = vmatmul.mubr.f32.gmra.mrb[14].mxu1 %v1163_v24 }
 0x4b6   : > { %v3056_v25 = vpop.eup %3055  ;;  %2490 = vmatprep.mubr.f32.mxu1 %v1164_v8 }
 0x4b7   : > { %v1165_v27 = vmul.f32 %v3056_v25, %v4028_v2  ;;  %v1397_v2 = vld [vmem:[#allocation5 + $0x28] sm:$0xff]  ;;  %2685 = vmatpush3.bf16.msra.mxu1 %v2682_v26 }
 0x4b8   : > { %v2686_v40 = vpack.c.bf16 %v1397_v2, %v1396_v35 }
 0x4b9   : > { %1181 = vst [vmem:[%s4039_s25 + $0x68] sm:$0xff] %v1165_v27  ;;  %2491 = vmatmul.mubr.f32.gmra.mrb[16].mxu1 %v1165_v27 }
 0x4ba   : > { %2493 = vmatprep.mubr.f32.mxu1 %v1166_v16  ;;  %2687 = vmatprep.subr.bf16.mxu1 %v2686_v40 }
 0x4bb   : > { %2689 = vmatpush3.bf16.msra.mxu1 %v2686_v40 }
 0x4bc   : > { %2691 = vmatprep.subr.bf16.mxu1 %v2690_v46 }
 0x4bd   : > { %2494 = vmatmul.mubr.f32.gmra.mrb[18].mxu1 %v1167_v20 }
 0x4bf   : > { %2693 = vmatpush3.bf16.msra.mxu1 %v2690_v46  ;;  %v4106_v46 = vld [vmem:[%s4305_s21] sm:$0xff] }
 0x4c0   : > { %2695 = vmatprep.subr.bf16.mxu1 %v2694_v36 }
 0x4c3   : > { %2697 = vmatpush3.bf16.msra.mxu1 %v2694_v36 }
 0x4c4   : > { %2699 = vmatprep.subr.bf16.mxu1 %v2698_v54 }
 0x4c7   : > { %2701 = vmatpush3.bf16.msra.mxu1 %v2698_v54 }
 0x4c8   : > { %2703 = vmatprep.subr.bf16.mxu1 %v2702_v43 }
 0x4cb   : > { %2705 = vmatpush3.bf16.msra.mxu1 %v2702_v43 }
 0x4cc   : > { %2707 = vmatprep.subr.bf16.mxu1 %v2706_v61 }
 0x4cf   : > { %2709 = vmatpush3.bf16.msra.mxu1 %v2706_v61  ;;  %v3092_v61 = vld [vmem:[%s3671_s5 + $0x18] sm:$0xff] }
 0x54e   : > { %v4073_v28 = vpop.f32.mrb[4].mxu1 }
 0x54f   : > { %v4075_v29 = vpop.f32.mrb[5].mxu1 }
 0x552   : > { %v4077_v30 = vpop.f32.mrb[6].mxu1 }
 0x553   : > { %v4079_v33 = vpop.f32.mrb[7].mxu1 }
 0x556   : > { %v2480_v38 = vpop.f32.mrb[8].mxu1 }
 0x557   : > { %v1270_v39 = vpop.f32.mrb[9].mxu1 }
 0x558   : > { %v2963_v41 = vpack.i.bf16 %v2480_v38, %v1270_v39 }
 0x55a   : > { %2964 = vrot.lane.b32.xlu0 %v2963_v41, %s3355_s2 }
 0x55b   : > { %v2483_v45 = vpop.f32.mrb[10].mxu1 }
 0x55c   : > { %v1280_v47 = vpop.f32.mrb[11].mxu1 }
 0x55d   : > { %v2968_v52 = vpack.i.bf16 %v2483_v45, %v1280_v47 }
 0x55f   : > { %2969 = vrot.lane.b32.xlu1 %v2968_v52, %s3355_s2  ;;  %v3089_v52 = vld [vmem:[%s3671_s5 + $0x8] sm:$0xff]  ;;  %s433_s5 = scalar_lea.vmem [#allocation11], %s2149_s24  ;;  %s4306_s24 = sld [smem:[#allocation25_spill]] }
 0x584   : > { %v2486_v49 = vpop.f32.mrb[12].mxu1 }
 0x585   : > { %v1290_v50 = vpop.f32.mrb[13].mxu1 }
 0x586   : > { %v2973_v62 = vpack.i.bf16 %v2486_v49, %v1290_v50 }
 0x588   : > { %2974 = vrot.lane.b32.xlu0 %v2973_v62, %s3353_s23  ;;  %v2489_v63 = vpop.f32.mrb[14].mxu1 }
 0x589   : > { %v1300_v55 = vpop.f32.mrb[15].mxu1 }
 0x58a   : > { %v2983_v1 = vpack.i.bf16 %v2489_v63, %v1300_v55 }
 0x58c   : > { %v2492_v3 = vpop.f32.mrb[16].mxu1 }
 0x58d   : > { %v1310_v60 = vpop.f32.mrb[17].mxu1 }
 0x58e   : > { %v2978_v4 = vpack.i.bf16 %v2492_v3, %v1310_v60 }
 0x590   : > { %2979 = vrot.lane.b32.xlu0 %v2978_v4, %s3354_s28  ;;  %v2495_v7 = vpop.f32.mrb[18].mxu1 }
 0x591   : > { %v1320_v5 = vpop.f32.mrb[19].mxu1 }
 0x592   : > { %v2988_v8 = vpack.i.bf16 %v2495_v7, %v1320_v5 }
 0x594   : > { %2984 = vrot.lane.b32.xlu0 %v2983_v1, %s3353_s23  ;;  %s2197_s23 = sshll.u32 %s4033_s30, 9  ;;  %s3356_s30 = smov [#allocation11]  }
 0x595   : > { %s4192_s17 = scalar_lea.hbm %s4306_s24, %s2197_s23  ;;  %s3239_s13 = sshll.u32 %s3356_s30, 4  ;;  %s3240_s13 = int_to_ptr.vmem [resolvable:$false] %s3239_s13 }
 0x596   : > { %s3241_s27 = scalar_lea.vmem %s3240_s13, 1024 }
 0x598   : > { %2989 = vrot.lane.b32.xlu0 %v2988_v8, %s3354_s28  ;;  %s1971_s28 = sshll.u32 %s433_s5, 4  ;;  %s4194_s28 = int_to_ptr.vmem [resolvable:$true] %s1971_s28 }
 0x599   : > { %s3235_s22 = scalar_lea.vmem %s4194_s28, 512  ;;  %p3242_p7 = scmp.lt.s32.totalorder %s4194_s28, %s3240_s13 }
 0x59a   : > { %p3236_p0 = scmp.ne.s32.totalorder %s4194_s28, %s3235_s22  ;;  %p3243_p11 = scmp.lt.s32.totalorder %s3241_s27, %s3235_s22 }
 0x59c   : > { %p3237_p3 = pnand %p3236_p0, %p3604_p5  ;;  %p3244_p1 = por %p3243_p11, %p3242_p7 }
 0x59e   : > { %p3238_p10 = pneg %p3237_p3 }
 0x5a0   : > { %p3245_p12 = pnand %p3244_p1, %p3238_p10 }
 0x5cc   : > { %v2965_v9 = vpop.permute.xlu0 %2964 }
 0x5cd   : > { %v2967_v17 = vunpack.i.h.bf16 %v2965_v9  ;;  %v2966_v20 = vunpack.i.l.bf16 %v2965_v9 }
 0x5cf   : > { %v1378_v23 = vsel %vm798_vm0, %v4073_v28, %v2967_v17  ;;  %v1377_v24 = vsel %vm798_vm0, %v4075_v29, %v2966_v20 }
 0x5d1   : > { %v2970_v25 = vpop.permute.xlu1 %2969 }
 0x5d2   : > { %v2972_v34 = vunpack.i.h.bf16 %v2970_v25  ;;  %v2971_v26 = vunpack.i.l.bf16 %v2970_v25  ;;  %v1595_v25 = vld [vmem:[#allocation7 + $0x28] sm:$0xff] }
 0x5d4   : > { %v1379_v39 = vsel %vm798_vm0, %v4079_v33, %v2971_v26  ;;  %v1380_v40 = vsel %vm798_vm0, %v4077_v30, %v2972_v34  ;;  %v1411_v33 = vrot.slane %v4106_v46, %v3834_v13  ;;  %v1599_v34 = vld [vmem:[#allocation7 + $0x48] sm:$0xff]  ;;  %v1601_v26 = vld [vmem:[#allocation7 + $0x58] sm:$0xff] }
 0x5fa   : > { %v2975_v16 = vpop.permute.xlu0 %2974 }
 0x5fb   : > { %v2977_v21 = vunpack.i.h.bf16 %v2975_v16  ;;  %v2976_v22 = vunpack.i.l.bf16 %v2975_v16 }
 0x5fd   : > { %v1383_v27 = vsel %vm1381_vm2, %v1378_v23, %v2977_v21  ;;  %v1382_v32 = vsel %vm1381_vm2, %v1377_v24, %v2976_v22  ;;  %v1591_v22 = vld [vmem:[#allocation7 + $0x8] sm:$0xff] }
 0x602   : > { %v2980_v11 = vpop.permute.xlu0 %2979 }
 0x603   : > { %v2982_v15 = vunpack.i.h.bf16 %v2980_v11  ;;  %v2981_v31 = vunpack.i.l.bf16 %v2980_v11  ;;  %v1593_v11 = vld [vmem:[#allocation7 + $0x18] sm:$0xff] }
 0x604   : > { %v2710_v23 = vpack.c.bf16 %v1593_v11, %v1591_v22  ;;  %v1750_v22 = vld [vmem:[#allocation10 + $0x98] sm:$0xff] }
 0x605   : > { %v1387_v14 = vsel %vm1386_vm3, %v1382_v32, %v2981_v31  ;;  %v1388_v6 = vsel %vm1386_vm3, %v1383_v27, %v2982_v15  ;;  %v1590_v15 = vld [vmem:[#allocation7] sm:$0xff]  ;;  %v1592_v31 = vld [vmem:[#allocation7 + $0x10] sm:$0xff]  ;;  %v1597_v27 = vld [vmem:[#allocation7 + $0x38] sm:$0xff] }
 0x606   : > { %v2985_v10 = vpop.permute.xlu0 %2984  ;;  %2528 = vmatprep.mubr.f32.mxu1 %v1387_v14  ;;  %v2712_v24 = vpack.c.bf16 %v1592_v31, %v1590_v15  ;;  %2711 = vmatprep.subr.bf16.mxu0 %v2710_v23  ;;  %v2714_v32 = vpack.c.bf16 %v1597_v27, %v1595_v25  ;;  %v1594_v14 = vld [vmem:[#allocation7 + $0x20] sm:$0xff]  ;;  %v1733_v15 = vld [vmem:[#allocation10 + $0x10] sm:$0xff]  ;;  %v1752_v25 = vld [vmem:[#allocation10 + $0xa8] sm:$0xff] }
 0x607   : > { %2529 = vmatmul.mubr.f32.vlgmr.msra.gmra.mrb[20].mxu1 %v1388_v6  ;;  %v2987_v28 = vunpack.i.h.bf16 %v2985_v10  ;;  %v2986_v35 = vunpack.i.l.bf16 %v2985_v10  ;;  %v1596_v6 = vld [vmem:[#allocation7 + $0x30] sm:$0xff]  ;;  %v1734_v31 = vld [vmem:[#allocation10 + $0x18] sm:$0xff] }
 0x608   : > { %2713 = vmatpush1.bf16.msra.mxu0 %v2712_v24  ;;  %v2716_v10 = vpack.c.bf16 %v1596_v6, %v1594_v14  ;;  %v1751_v24 = vld [vmem:[#allocation10 + $0xa0] sm:$0xff]  ;;  %v2748_v27 = vpack.c.bf16 %v1734_v31, %v1733_v15  ;;  %v1736_v6 = vld [vmem:[#allocation10 + $0x28] sm:$0xff] }
 0x609   : > { %v1384_v41 = vsel %vm1381_vm2, %v1379_v39, %v2986_v35  ;;  %v1385_v42 = vsel %vm1381_vm2, %v1380_v40, %v2987_v28  ;;  %2715 = vmatprep.subr.bf16.mxu0 %v2714_v32  ;;  %v2718_v28 = vpack.c.bf16 %v1601_v26, %v1599_v34  ;;  %v1598_v35 = vld [vmem:[#allocation7 + $0x40] sm:$0xff]  ;;  %v1605_v39 = vld [vmem:[#allocation7 + $0x78] sm:$0xff]  ;;  %v2750_v32 = vpack.c.bf16 %v1752_v25, %v1751_v24 }
 0x60a   : > { %v2990_v2 = vpop.permute.xlu0 %2989  ;;  %v1735_v14 = vld [vmem:[#allocation10 + $0x20] sm:$0xff]  ;;  %v1754_v34 = vld [vmem:[#allocation10 + $0xb8] sm:$0xff] }
 0x60b   : > { %v2992_v38 = vunpack.i.h.bf16 %v2990_v2  ;;  %v2991_v29 = vunpack.i.l.bf16 %v2990_v2  ;;  %v1600_v2 = vld [vmem:[#allocation7 + $0x50] sm:$0xff]  ;;  %v2752_v26 = vpack.c.bf16 %v1736_v6, %v1735_v14 }
 0x60c   : > { %2717 = vmatpush1.bf16.msra.mxu0 %v2716_v10  ;;  %v1753_v10 = vld [vmem:[#allocation10 + $0xb0] sm:$0xff] }
 0x60d   : > { %v1389_v44 = vsel %vm1386_vm3, %v1384_v41, %v2991_v29  ;;  %v1390_v45 = vsel %vm1386_vm3, %v1385_v42, %v2992_v38  ;;  %v2720_v38 = vpack.c.bf16 %v1600_v2, %v1598_v35  ;;  %2719 = vmatprep.subr.bf16.mxu0 %v2718_v28  ;;  %v1603_v29 = vld [vmem:[#allocation7 + $0x68] sm:$0xff]  ;;  %v1602_v41 = vld [vmem:[#allocation7 + $0x60] sm:$0xff]  ;;  %v1604_v42 = vld [vmem:[#allocation7 + $0x70] sm:$0xff]  ;;  %v2754_v28 = vpack.c.bf16 %v1754_v34, %v1753_v10 }
 0x60e   : > { %2531 = vmatprep.mubr.f32.mxu1 %v1389_v44  ;;  %v2722_v40 = vpack.c.bf16 %v1605_v39, %v1603_v29  ;;  %v2724_v44 = vpack.c.bf16 %v1604_v42, %v1602_v41  ;;  %v1737_v35 = vld [vmem:[#allocation10 + $0x30] sm:$0xff]  ;;  %v1738_v2 = vld [vmem:[#allocation10 + $0x38] sm:$0xff]  ;;  %v1756_v29 = vld [vmem:[#allocation10 + $0xc8] sm:$0xff] }
 0x60f   : > { %2532 = vmatmul.mubr.f32.gmra.mrb[22].mxu1 %v1390_v45  ;;  %v1607_v45 = vld [vmem:[#allocation7 + $0x88] sm:$0xff]  ;;  %v2756_v39 = vpack.c.bf16 %v1738_v2, %v1737_v35 }
 0x610   : > { %2721 = vmatpush1.bf16.msra.mxu0 %v2720_v38  ;;  %v1755_v38 = vld [vmem:[#allocation10 + $0xc0] sm:$0xff]  ;;  %v1740_v42 = vld [vmem:[#allocation10 + $0x48] sm:$0xff] }
 0x611   : > { %2723 = vmatprep.subr.bf16.mxu0 %v2722_v40  ;;  %v2758_v40 = vpack.c.bf16 %v1756_v29, %v1755_v38  ;;  %v1739_v41 = vld [vmem:[#allocation10 + $0x40] sm:$0xff] }
 0x614   : > { %2725 = vmatpush1.bf16.msra.mxu0 %v2724_v44  ;;  %v1757_v44 = vld [vmem:[#allocation10 + $0xd0] sm:$0xff] }
 0x6da   : > { %v2530_v30 = vpop.f32.mrb[20].mxu1 }
 0x6db   : > { %v1484_v47 = vadd.f32 %v2530_v30, %v1411_v33  ;;  %v1478_v48 = vpop.f32.mrb[21].mxu1 }
 0x6dc   : > { %v1479_v51 = vadd.f32 %v1478_v48, %v1411_v33  ;;  %v1608_v48 = vld [vmem:[#allocation7 + $0x90] sm:$0xff] }
 0x6dd   : > { %v1498_v36 = vadd.f32 %v3089_v52, %v1484_v47  ;;  %v1606_v47 = vld [vmem:[#allocation7 + $0x80] sm:$0xff]  ;;  %v1611_v52 = vld [vmem:[#allocation7 + $0xa8] sm:$0xff] }
 0x6de   : > { %v1497_v53 = vadd.f32 %v3090_v37, %v1479_v51  ;;  %v2728_v51 = vpack.c.bf16 %v1608_v48, %v1606_v47  ;;  %v1741_v47 = vld [vmem:[#allocation10 + $0x50] sm:$0xff]  ;;  %v1742_v48 = vld [vmem:[#allocation10 + $0x58] sm:$0xff] }
 0x6df   : > { %1503 = vadd.xlane.f32.xlu1 %v1498_v36 }
 0x6e0   : > { %1501 = vadd.xlane.f32.xlu0 %v1497_v53 }
 0x6e2   : > { %v2533_v54 = vpop.f32.mrb[22].mxu1 }
 0x6e3   : > { %v1488_v56 = vpop.f32.mrb[23].mxu1  ;;  %v1494_v43 = vadd.f32 %v2533_v54, %v1411_v33  ;;  %v1612_v54 = vld [vmem:[#allocation7 + $0xb0] sm:$0xff] }
 0x6e4   : > { %v1489_v57 = vadd.f32 %v1488_v56, %v1411_v33  ;;  %v1609_v33 = vld [vmem:[#allocation7 + $0x98] sm:$0xff] }
 0x6e5   : > { %v1500_v49 = vadd.f32 %v3092_v61, %v1494_v43  ;;  %v2726_v30 = vpack.c.bf16 %v1609_v33, %v1607_v45  ;;  %v1617_v43 = vld [vmem:[#allocation7 + $0xd8] sm:$0xff]  ;;  %v1616_v61 = vld [vmem:[#allocation7 + $0xd0] sm:$0xff]  ;;  %v2760_v33 = vpack.c.bf16 %v1740_v42, %v1739_v41 }
 0x6e6   : > { %v1499_v59 = vadd.f32 %v3091_v58, %v1489_v57  ;;  %v1615_v57 = vld [vmem:[#allocation7 + $0xc8] sm:$0xff]  ;;  %v1758_v45 = vld [vmem:[#allocation10 + $0xd8] sm:$0xff] }
 0x6e7   : > { %2727 = vmatprep.subr.bf16.mxu0 %v2726_v30  ;;  %v2734_v58 = vpack.c.bf16 %v1617_v43, %v1615_v57  ;;  %v2762_v30 = vpack.c.bf16 %v1758_v45, %v1757_v44 }
 0x6e8   : > { %1505 = vadd.xlane.f32.xlu0 %v1499_v59  ;;  %2729 = vmatpush1.bf16.msra.mxu0 %v2728_v51  ;;  %v1759_v51 = vld [vmem:[#allocation10 + $0xe0] sm:$0xff] }
 0x6ec   : > { %1507 = vadd.xlane.f32.xlu0 %v1500_v49 }
 0x76c   : > { %v1504_v50 = vpop.xlane.xlu1 %1503 }
 0x76d   : > { %v1511_v62 = vmul.f32 0.0078125, %v1504_v50  ;;  %v1502_v63 = vpop.xlane.xlu0 %1501  ;;  %v1619_v50 = vld [vmem:[#allocation7 + $0xe8] sm:$0xff] }
 0x76e   : > { %v1510_v55 = vmul.f32 0.0078125, %v1502_v63  ;;  %v1618_v63 = vld [vmem:[#allocation7 + $0xe0] sm:$0xff] }
 0x76f   : > { %v4114_v1 = vsub.f32 %v1498_v36, %v1511_v62  ;;  %v1613_v36 = vld [vmem:[#allocation7 + $0xb8] sm:$0xff] }
 0x770   : > { %v4116_v3 = vsub.f32 %v1497_v53, %v1510_v55  ;;  %v2730_v37 = vpack.c.bf16 %v1613_v36, %v1611_v52  ;;  %v1610_v53 = vld [vmem:[#allocation7 + $0xa0] sm:$0xff]  ;;  %v1621_v62 = vld [vmem:[#allocation7 + $0xf8] sm:$0xff]  ;;  %v1760_v52 = vld [vmem:[#allocation10 + $0xe8] sm:$0xff]  ;;  %v2764_v36 = vpack.c.bf16 %v1742_v48, %v1741_v47 }
 0x771   : > { %v1519_v60 = vmul.f32 %v4114_v1, %v4114_v1  ;;  %v2732_v56 = vpack.c.bf16 %v1612_v54, %v1610_v53  ;;  %v2738_v55 = vpack.c.bf16 %v1621_v62, %v1619_v50  ;;  %v1761_v48 = vld [vmem:[#allocation10 + $0xf0] sm:$0xff] }
 0x772   : > { %v1518_v4 = vmul.f32 %v4116_v3, %v4116_v3  ;;  %2731 = vmatprep.subr.bf16.mxu0 %v2730_v37  ;;  %v2766_v37 = vpack.c.bf16 %v1760_v52, %v1759_v51  ;;  %v1762_v51 = vld [vmem:[#allocation10 + $0xf8] sm:$0xff] }
 0x773   : > { %1524 = vadd.xlane.f32.xlu1 %v1519_v60  ;;  %2733 = vmatpush1.bf16.msra.mxu0 %v2732_v56  ;;  %v1620_v60 = vld [vmem:[#allocation7 + $0xf0] sm:$0xff]  ;;  %v2770_v52 = vpack.c.bf16 %v1762_v51, %v1761_v48 }
 0x774   : > { %1522 = vadd.xlane.f32.xlu0 %v1518_v4  ;;  %2735 = vmatprep.subr.bf16.mxu0 %v2734_v58  ;;  %v2740_v4 = vpack.c.bf16 %v1620_v60, %v1618_v63 }
 0x775   : > { %v1506_v7 = vpop.xlane.xlu0 %1505 }
 0x776   : > { %v1512_v5 = vmul.f32 0.0078125, %v1506_v7  ;;  %v1747_v7 = vld [vmem:[#allocation10 + $0x80] sm:$0xff] }
 0x778   : > { %v4122_v8 = vsub.f32 %v1499_v59, %v1512_v5  ;;  %v1614_v59 = vld [vmem:[#allocation7 + $0xc0] sm:$0xff]  ;;  %v1748_v5 = vld [vmem:[#allocation10 + $0x88] sm:$0xff] }
 0x779   : > { %v1508_v9 = vpop.xlane.xlu0 %1507 }
 0x77a   : > { %v1513_v16 = vmul.f32 0.0078125, %v1508_v9  ;;  %v1520_v17 = vmul.f32 %v4122_v8, %v4122_v8  ;;  %v1731_v9 = vld [vmem:[#allocation10] sm:$0xff] }
 0x77c   : > { %v4126_v20 = vsub.f32 %v1500_v49, %v1513_v16  ;;  %1526 = vadd.xlane.f32.xlu0 %v1520_v17  ;;  %v2736_v49 = vpack.c.bf16 %v1616_v61, %v1614_v59  ;;  %v2742_v16 = vpack.c.bf16 %v1748_v5, %v1747_v7  ;;  %v1732_v17 = vld [vmem:[#allocation10 + $0x8] sm:$0xff] }
 0x77d   : > { %v2744_v11 = vpack.c.bf16 %v1732_v17, %v1731_v9 }
 0x77e   : > { %v1521_v21 = vmul.f32 %v4126_v20, %v4126_v20  ;;  %2737 = vmatpush1.bf16.msra.mxu0 %v2736_v49  ;;  %2743 = vmatprep.subr.bf16.mxu1 %v2742_v16 }
 0x77f   : > { %2739 = vmatprep.subr.bf16.mxu0 %v2738_v55  ;;  %2745 = vmatpush3.bf16.msra.mxu1 %v2744_v11 }
 0x780   : > { %1528 = vadd.xlane.f32.xlu1 %v1521_v21  ;;  %v1749_v21 = vld [vmem:[#allocation10 + $0x90] sm:$0xff] }
 0x781   : > { %v2746_v23 = vpack.c.bf16 %v1750_v22, %v1749_v21 }
 0x782   : > { %2741 = vmatpush1.bf16.msra.mxu0 %v2740_v4 }
 0x783   : > { %2747 = vmatprep.subr.bf16.mxu1 %v2746_v23  ;;  %v1573_v23 = vrot.slane %v4106_v46, %v3850_v19 }
 0x784   : > { %2749 = vmatpush3.bf16.msra.mxu1 %v2748_v27 }
 0x785   : > { %2751 = vmatprep.subr.bf16.mxu1 %v2750_v32  ;;  %v1585_v32 = vrot.slane %v4106_v46, %v523_v18  ;;  %v1575_v6 = vmul.f32 %v1573_v23, %v4114_v1  ;;  %v1576_v18 = vmul.f32 %v1573_v23, %v4122_v8  ;;  %v1577_v41 = vmul.f32 %v1573_v23, %v4126_v20  ;;  %v1743_v8 = vld [vmem:[#allocation10 + $0x60] sm:$0xff]  ;;  %v1745_v20 = vld [vmem:[#allocation10 + $0x70] sm:$0xff] }
 0x788   : > { %2753 = vmatpush3.bf16.msra.mxu1 %v2752_v26  ;;  %v1574_v26 = vmul.f32 %v1573_v23, %v4116_v3 }
 0x789   : > { %2755 = vmatprep.subr.bf16.mxu1 %v2754_v28 }
 0x78c   : > { %2757 = vmatpush3.bf16.msra.mxu1 %v2756_v39 }
 0x78d   : > { %2759 = vmatprep.subr.bf16.mxu1 %v2758_v40 }
 0x790   : > { %2761 = vmatpush3.bf16.msra.mxu1 %v2760_v33 }
 0x791   : > { %2763 = vmatprep.subr.bf16.mxu1 %v2762_v30  ;;  %v1744_v30 = vld [vmem:[#allocation10 + $0x68] sm:$0xff] }
 0x792   : > { %v2768_v47 = vpack.c.bf16 %v1744_v30, %v1743_v8 }
 0x794   : > { %2765 = vmatpush3.bf16.msra.mxu1 %v2764_v36  ;;  %v1746_v36 = vld [vmem:[#allocation10 + $0x78] sm:$0xff] }
 0x795   : > { %2767 = vmatprep.subr.bf16.mxu1 %v2766_v37  ;;  %v2772_v37 = vpack.c.bf16 %v1746_v36, %v1745_v20 }
 0x798   : > { %2769 = vmatpush3.bf16.msra.mxu1 %v2768_v47 }
 0x799   : > { %2771 = vmatprep.subr.bf16.mxu1 %v2770_v52 }
 0x79c   : > { %2773 = vmatpush3.bf16.msra.mxu1 %v2772_v37 }
 0x800   : > { %v1525_v53 = vpop.xlane.xlu1 %1524 }
 0x801   : > { %v1531_v54 = vmul.f32 0.007874016, %v1525_v53  ;;  %v1523_v56 = vpop.xlane.xlu0 %1522  ;;  %v1622_v53 = vld [vmem:[#allocation8] sm:$0x3] }
 0x802   : > { %v1530_v57 = vmul.f32 0.007874016, %v1523_v56 }
 0x803   : > { %3057 = vrsqrt.f32 %v1531_v54  ;;  %vm1543_vm4 = vcmp.eq.f32.partialorder %v1531_v54, inf  ;;  %vm1545_vm5 = vcmp.eq.f32.partialorder %v1531_v54, 0.0  ;;  %v1546_v63 = vand.u32 2147483648, %v1531_v54 }
 0x804   : > { %3059 = vrsqrt.f32 %v1530_v57  ;;  %vm1536_vm6 = vcmp.eq.f32.partialorder %v1530_v57, inf  ;;  %v1539_v4 = vand.u32 2147483648, %v1530_v57  ;;  %vm1538_vm7 = vcmp.eq.f32.partialorder %v1530_v57, 0.0 }
 0x809   : > { %v1527_v43 = vpop.xlane.xlu0 %1526 }
 0x80a   : > { %v1532_v58 = vmul.f32 0.007874016, %v1527_v43 }
 0x80c   : > { %3061 = vrsqrt.f32 %v1532_v58  ;;  %vm1550_vm8 = vcmp.eq.f32.partialorder %v1532_v58, inf  ;;  %v1553_v11 = vand.u32 2147483648, %v1532_v58  ;;  %vm1552_vm9 = vcmp.eq.f32.partialorder %v1532_v58, 0.0 }
 0x80d   : > { %v3058_v59 = vpop.eup %3057  ;;  %v1529_v61 = vpop.xlane.xlu1 %1528 }
 0x80e   : > { %v3060_v49 = vpop.eup %3059  ;;  %v1542_v50 = vmul.f32 %v3058_v59, %v1531_v54  ;;  %v1533_v62 = vmul.f32 0.007874016, %v1529_v61 }
 0x80f   : > { %v1535_v55 = vmul.f32 %v3060_v49, %v1530_v57 }
 0x810   : > { %v1544_v60 = vsel %vm1543_vm4, %v1531_v54, %v1542_v50  ;;  %3063 = vrsqrt.f32 %v1533_v62  ;;  %vm1557_vm10 = vcmp.eq.f32.partialorder %v1533_v62, inf  ;;  %v1560_v14 = vand.u32 2147483648, %v1533_v62 }
 0x811   : > { %v1537_v7 = vsel %vm1536_vm6, %v1530_v57, %v1535_v55  ;;  %v1547_v5 = vsel %vm1545_vm5, %v1546_v63, %v1544_v60  ;;  %vm1559_vm11 = vcmp.eq.f32.partialorder %v1533_v62, 0.0  ;;  %v1627_v54 = vrot.slane %v1622_v53, %v3834_v13 }
 0x812   : > { %v1540_v9 = vsel %vm1538_vm7, %v1539_v4, %v1537_v7  ;;  %v1563_v16 = vadd.f32 1e-06, %v1547_v5 }
 0x813   : > { %v1562_v17 = vadd.f32 1e-06, %v1540_v9 }
 0x814   : > { %3065 = vrcp.f32 %v1563_v16 }
 0x815   : > { %3067 = vrcp.f32 %v1562_v17 }
 0x816   : > { %v3062_v21 = vpop.eup %3061 }
 0x817   : > { %v1549_v22 = vmul.f32 %v3062_v21, %v1532_v58 }
 0x819   : > { %v1551_v15 = vsel %vm1550_vm8, %v1532_v58, %v1549_v22 }
 0x81a   : > { %v3064_v31 = vpop.eup %3063  ;;  %v1554_v24 = vsel %vm1552_vm9, %v1553_v11, %v1551_v15  ;;  %v1765_v15 = vsub.s32 3, %v3831_v12 }
 0x81b   : > { %v1556_v25 = vmul.f32 %v3064_v31, %v1533_v62  ;;  %v1564_v27 = vadd.f32 1e-06, %v1554_v24 }
 0x81c   : > { %v1766_v24 = vrot.slane %v4106_v46, %v1765_v15 }
 0x81d   : > { %v1558_v10 = vsel %vm1557_vm10, %v1533_v62, %v1556_v25  ;;  %3069 = vrcp.f32 %v1564_v27 }
 0x81e   : > { %v3066_v34 = vpop.eup %3065  ;;  %v1561_v28 = vsel %vm1559_vm11, %v1560_v14, %v1558_v10 }
 0x81f   : > { %v3068_v35 = vpop.eup %3067  ;;  %v1579_v2 = vmul.f32 %v3066_v34, %v1575_v6  ;;  %v1565_v38 = vadd.f32 1e-06, %v1561_v28 }
 0x820   : > { %v1578_v29 = vmul.f32 %v3068_v35, %v1574_v26 }
 0x821   : > { %v4137_v39 = vadd.f32 %v1585_v32, %v1579_v2  ;;  %3071 = vrcp.f32 %v1565_v38 }
 0x822   : > { %v4139_v40 = vadd.f32 %v1585_v32, %v1578_v29 }
 0x824   : > { %1699 = vmatmul.mubr.f32.vlgmr.msra.gmra.mrb[24].mxu0 %v4139_v40 }
 0x825   : > { %1704 = vmatprep.mubr.f32.mxu0 %v3352_v0 }
 0x827   : > { %v3070_v1 = vpop.eup %3069 }
 0x828   : > { %1705 = vmatmul.mubr.f32.gmra.mrb[26].mxu0 %v4137_v39  ;;  %v1580_v3 = vmul.f32 %v3070_v1, %v1576_v18 }
 0x829   : > { %1710 = vmatprep.mubr.f32.mxu0 %v3352_v0 }
 0x82a   : > { %v4147_v42 = vadd.f32 %v1585_v32, %v1580_v3 }
 0x82b   : > { %v3072_v44 = vpop.eup %3071 }
 0x82c   : > { %1711 = vmatmul.mubr.f32.gmra.mrb[28].mxu0 %v4147_v42  ;;  %v1581_v45 = vmul.f32 %v3072_v44, %v1577_v41 }
 0x82d   : > { %1716 = vmatprep.mubr.f32.mxu0 %v3352_v0  ;;  %v1631_v0 = vrot.slane %v1622_v53, %v3850_v19 }
 0x82e   : > { %v4151_v33 = vadd.f32 %v1585_v32, %v1581_v45 }
 0x830   : > { %1717 = vmatmul.mubr.f32.gmra.mrb[30].mxu0 %v4151_v33 }
 0x8f7   : > { %v1700_v56 = vpop.f32.mrb[24].mxu0 }
 0x8f8   : > { %v1701_v57 = vadd.f32 %v1700_v56, %v1627_v54  ;;  %v1702_v43 = vpop.f32.mrb[25].mxu0 }
 0x8f9   : > { %v1703_v58 = vadd.f32 %v1702_v43, %v1631_v0 }
 0x8fa   : > { %v1723_v49 = vmax.f32 %v1701_v57, 0.0 }
 0x8fb   : > { %v1724_v59 = vmax.f32 %v1703_v58, 0.0  ;;  %v1706_v61 = vpop.f32.mrb[26].mxu0 }
 0x8fc   : > { %v1707_v50 = vadd.f32 %v1706_v61, %v1627_v54  ;;  %v1708_v62 = vpop.f32.mrb[27].mxu0 }
 0x8fd   : > { %v1709_v63 = vadd.f32 %v1708_v62, %v1631_v0  ;;  %1831 = vmatprep.mubr.f32.mxu1 %v1724_v59 }
 0x8fe   : > { %1832 = vmatmul.mubr.f32.vlgmr.msra.gmra.mrb[24].mxu1 %v1723_v49  ;;  %v1725_v4 = vmax.f32 %v1707_v50, 0.0 }
 0x8ff   : > { %v1726_v55 = vmax.f32 %v1709_v63, 0.0  ;;  %v1712_v60 = vpop.f32.mrb[28].mxu0 }
 0x900   : > { %v1713_v7 = vadd.f32 %v1712_v60, %v1627_v54  ;;  %v1714_v5 = vpop.f32.mrb[29].mxu0 }
 0x901   : > { %v1715_v13 = vadd.f32 %v1714_v5, %v1631_v0  ;;  %1836 = vmatprep.mubr.f32.mxu1 %v1726_v55 }
 0x902   : > { %1837 = vmatmul.mubr.f32.gmra.mrb[26].mxu1 %v1725_v4  ;;  %v1727_v16 = vmax.f32 %v1713_v7, 0.0 }
 0x903   : > { %v1728_v19 = vmax.f32 %v1715_v13, 0.0  ;;  %v1718_v9 = vpop.f32.mrb[30].mxu0 }
 0x904   : > { %v1719_v17 = vadd.f32 %v1718_v9, %v1627_v54  ;;  %v1720_v21 = vpop.f32.mrb[31].mxu0 }
 0x905   : > { %v1721_v22 = vadd.f32 %v1720_v21, %v1631_v0  ;;  %1841 = vmatprep.mubr.f32.mxu1 %v1728_v19 }
 0x906   : > { %1842 = vmatmul.mubr.f32.gmra.mrb[28].mxu1 %v1727_v16  ;;  %v1729_v23 = vmax.f32 %v1719_v17, 0.0  ;;  %v1926_v17 = vsub.s32 4, %v3831_v12 }
 0x907   : > { %v1730_v11 = vmax.f32 %v1721_v22, 0.0 }
 0x909   : > { %1846 = vmatprep.mubr.f32.mxu1 %v1730_v11 }
 0x90a   : > { %1847 = vmatmul.mubr.f32.gmra.mrb[30].mxu1 %v1729_v23 }
 0x9d1   : > { %v2334_v31 = vpop.f32.mrb[24].mxu1 }
 0x9d2   : > { %v2335_v25 = vpop.f32.mrb[25].mxu1 }
 0x9d3   : > { %v2336_v27 = vadd.f32 %v2335_v25, %v2334_v31  ;;  %v1927_v25 = vrot.slane %v4106_v46, %v1926_v17 }
 0x9d5   : > { %v1834_v32 = vadd.f32 %v2336_v27, %v1766_v24  ;;  %v2337_v14 = vpop.f32.mrb[26].mxu1 }
 0x9d6   : > { %v2338_v6 = vpop.f32.mrb[27].mxu1 }
 0x9d7   : > { %v2339_v10 = vadd.f32 %v2338_v6, %v2337_v14  ;;  %v1852_v34 = vadd.f32 %v1834_v32, %v4139_v40 }
 0x9d9   : > { %v1839_v26 = vadd.f32 %v2339_v10, %v1766_v24  ;;  %1856 = vadd.xlane.f32.xlu0 %v1852_v34  ;;  %v2340_v28 = vpop.f32.mrb[28].mxu1 }
 0x9da   : > { %v2341_v35 = vpop.f32.mrb[29].mxu1 }
 0x9db   : > { %v2342_v2 = vadd.f32 %v2341_v35, %v2340_v28  ;;  %v1853_v38 = vadd.f32 %v1839_v26, %v4137_v39 }
 0x9dd   : > { %v1844_v29 = vadd.f32 %v2342_v2, %v1766_v24  ;;  %1858 = vadd.xlane.f32.xlu1 %v1853_v38  ;;  %v2343_v18 = vpop.f32.mrb[30].mxu1 }
 0x9de   : > { %v2344_v1 = vpop.f32.mrb[31].mxu1 }
 0x9df   : > { %v2345_v3 = vadd.f32 %v2344_v1, %v2343_v18  ;;  %v1854_v41 = vadd.f32 %v1844_v29, %v4147_v42 }
 0x9e1   : > { %v1849_v44 = vadd.f32 %v2345_v3, %v1766_v24  ;;  %1860 = vadd.xlane.f32.xlu0 %v1854_v41  ;;  %v1938_v24 = vsub.s32 5, %v3831_v12 }
 0x9e3   : > { %v1855_v45 = vadd.f32 %v1849_v44, %v4151_v33 }
 0x9e5   : > { %1862 = vadd.xlane.f32.xlu1 %v1855_v45 }
 0xa66   : > { %v1857_v40 = vpop.xlane.xlu0 %1856 }
 0xa67   : > { %v1864_v8 = vmul.f32 0.0078125, %v1857_v40 }
 0xa69   : > { %v4162_v30 = vsub.f32 %v1852_v34, %v1864_v8  ;;  %v1939_v34 = vrot.slane %v4106_v46, %v1938_v24 }
 0xa6a   : > { %v1859_v47 = vpop.xlane.xlu1 %1858 }
 0xa6b   : > { %v1865_v48 = vmul.f32 0.0078125, %v1859_v47  ;;  %v1872_v39 = vmul.f32 %v4162_v30, %v4162_v30  ;;  %v1928_v26 = vmul.f32 %v1927_v25, %v4162_v30 }
 0xa6d   : > { %v4166_v51 = vsub.f32 %v1853_v38, %v1865_v48  ;;  %1876 = vadd.xlane.f32.xlu0 %v1872_v39 }
 0xa6e   : > { %v1861_v52 = vpop.xlane.xlu0 %1860 }
 0xa6f   : > { %v1866_v20 = vmul.f32 0.0078125, %v1861_v52  ;;  %v1873_v42 = vmul.f32 %v4166_v51, %v4166_v51  ;;  %v1929_v38 = vmul.f32 %v1927_v25, %v4166_v51 }
 0xa71   : > { %v4170_v36 = vsub.f32 %v1854_v41, %v1866_v20  ;;  %1878 = vadd.xlane.f32.xlu1 %v1873_v42 }
 0xa72   : > { %v1863_v33 = vpop.xlane.xlu1 %1862 }
 0xa73   : > { %v1867_v37 = vmul.f32 0.0078125, %v1863_v33  ;;  %v1874_v53 = vmul.f32 %v4170_v36, %v4170_v36  ;;  %v1930_v3 = vmul.f32 %v1927_v25, %v4170_v36 }
 0xa75   : > { %v4174_v54 = vsub.f32 %v1855_v45, %v1867_v37  ;;  %1880 = vadd.xlane.f32.xlu0 %v1874_v53 }
 0xa77   : > { %v1875_v0 = vmul.f32 %v4174_v54, %v4174_v54  ;;  %v1931_v45 = vmul.f32 %v1927_v25, %v4174_v54 }
 0xa79   : > { %1882 = vadd.xlane.f32.xlu1 %v1875_v0 }
 0xafa   : > { %v1877_v56 = vpop.xlane.xlu0 %1876 }
 0xafb   : > { %v1884_v57 = vmul.f32 0.007874016, %v1877_v56 }
 0xafd   : > { %3073 = vrsqrt.f32 %v1884_v57  ;;  %vm1890_vm12 = vcmp.eq.f32.partialorder %v1884_v57, inf  ;;  %v1893_v55 = vand.u32 2147483648, %v1884_v57  ;;  %vm1892_vm13 = vcmp.eq.f32.partialorder %v1884_v57, 0.0 }
 0xafe   : > { %v1879_v43 = vpop.xlane.xlu1 %1878 }
 0xaff   : > { %v1885_v58 = vmul.f32 0.007874016, %v1879_v43 }
 0xb01   : > { %3075 = vrsqrt.f32 %v1885_v58  ;;  %vm1897_vm14 = vcmp.eq.f32.partialorder %v1885_v58, inf  ;;  %v1900_v19 = vand.u32 2147483648, %v1885_v58  ;;  %vm1899_vm15 = vcmp.eq.f32.partialorder %v1885_v58, 0.0 }
 0xb02   : > { %v1881_v59 = vpop.xlane.xlu0 %1880 }
 0xb03   : > { %v1886_v61 = vmul.f32 0.007874016, %v1881_v59 }
 0xb05   : > { %3077 = vrsqrt.f32 %v1886_v61  ;;  %vm1904_vm0 = vcmp.eq.f32.partialorder %v1886_v61, inf  ;;  %v1907_v23 = vand.u32 2147483648, %v1886_v61  ;;  %vm1906_vm1 = vcmp.eq.f32.partialorder %v1886_v61, 0.0 }
 0xb06   : > { %v1883_v49 = vpop.xlane.xlu1 %1882 }
 0xb07   : > { %v3074_v50 = vpop.eup %3073  ;;  %v1887_v62 = vmul.f32 0.007874016, %v1883_v49 }
 0xb08   : > { %v1889_v63 = vmul.f32 %v3074_v50, %v1884_v57 }
 0xb09   : > { %3079 = vrsqrt.f32 %v1887_v62  ;;  %vm1911_vm2 = vcmp.eq.f32.partialorder %v1887_v62, inf  ;;  %v1914_v6 = vand.u32 2147483648, %v1887_v62  ;;  %vm1913_vm3 = vcmp.eq.f32.partialorder %v1887_v62, 0.0 }
 0xb0a   : > { %v1891_v60 = vsel %vm1890_vm12, %v1884_v57, %v1889_v63 }
 0xb0b   : > { %v3076_v4 = vpop.eup %3075  ;;  %v1894_v7 = vsel %vm1892_vm13, %v1893_v55, %v1891_v60 }
 0xb0c   : > { %v1916_v5 = vadd.f32 1e-06, %v1894_v7  ;;  %v1896_v13 = vmul.f32 %v3076_v4, %v1885_v58 }
 0xb0e   : > { %3081 = vrcp.f32 %v1916_v5  ;;  %v1898_v9 = vsel %vm1897_vm14, %v1885_v58, %v1896_v13 }
 0xb0f   : > { %v3078_v16 = vpop.eup %3077  ;;  %v1901_v21 = vsel %vm1899_vm15, %v1900_v19, %v1898_v9 }
 0xb10   : > { %v1917_v22 = vadd.f32 1e-06, %v1901_v21  ;;  %v1903_v11 = vmul.f32 %v3078_v16, %v1886_v61 }
 0xb12   : > { %3083 = vrcp.f32 %v1917_v22  ;;  %v1905_v15 = vsel %vm1904_vm0, %v1886_v61, %v1903_v11 }
 0xb13   : > { %v3080_v31 = vpop.eup %3079  ;;  %v1908_v27 = vsel %vm1906_vm1, %v1907_v23, %v1905_v15 }
 0xb14   : > { %v1918_v32 = vadd.f32 1e-06, %v1908_v27  ;;  %v1910_v14 = vmul.f32 %v3080_v31, %v1887_v62 }
 0xb16   : > { %3085 = vrcp.f32 %v1918_v32  ;;  %v1912_v10 = vsel %vm1911_vm2, %v1887_v62, %v1910_v14 }
 0xb17   : > { %v1915_v28 = vsel %vm1913_vm3, %v1914_v6, %v1912_v10 }
 0xb18   : > { %v3082_v35 = vpop.eup %3081  ;;  %v1919_v2 = vadd.f32 1e-06, %v1915_v28 }
 0xb19   : > { %v1932_v12 = vmul.f32 %v3082_v35, %v1928_v26 }
 0xb1a   : > { %3087 = vrcp.f32 %v1919_v2 }
 0xb1b   : > { %v1940_v29 = vadd.f32 %v1939_v34, %v1932_v12 }
 0xb1c   : > { %v3084_v18 = vpop.eup %3083 }
 0xb1d   : > { %v1933_v1 = vmul.f32 %v3084_v18, %v1929_v38  ;;  %1944 = vst [vmem:[%s433_s5] sm:$0xff] %v1940_v29 }
 0xb1f   : > { %v1941_v46 = vadd.f32 %v1939_v34, %v1933_v1 }
 0xb20   : > { %v3086_v41 = vpop.eup %3085 }
 0xb21   : > { %v1934_v44 = vmul.f32 %v3086_v41, %v1930_v3  ;;  %1945 = vst [vmem:[%s433_s5 + $0x8] sm:$0xff] %v1941_v46 }
 0xb23   : > { %v1942_v40 = vadd.f32 %v1939_v34, %v1934_v44 }
 0xb24   : > { %v3088_v8 = vpop.eup %3087 }
 0xb25   : > { %v1935_v30 = vmul.f32 %v3088_v8, %v1931_v45  ;;  %1946 = vst [vmem:[%s433_s5 + $0x10] sm:$0xff] %v1942_v40 }
 0xb27   : > { %v1943_v47 = vadd.f32 %v1939_v34, %v1935_v30 }
 0xb29   : > { %1947 = vst [vmem:[%s433_s5 + $0x18] sm:$0xff] %v1943_v47 }
 0xb2a   : > { %3248 = shalt.err (!%p3245_p12)
}
 0xb2b   : > { %s3249_s9 = scalar_lea.hbm %s4192_s17, 512  ;;  %s3253_s3 = scalar_lea.hbm %s4306_s24, 4096 }
 0xb2c   : > { %p3250_p2 = scmp.ne.s32.totalorder %s4192_s17, %s3249_s9  ;;  %p3254_p4 = scmp.lt.u32.totalorder %s4192_s17, %s4306_s24 }
 0xb2d   : > { %p3255_p9 = scmp.lt.u32.totalorder %s3253_s3, %s3249_s9  ;;  %p3257_p0 = scmp.lt.u32.totalorder %s3249_s9, %s4192_s17 }
 0xb2e   : > { %p3251_p8 = pnand %p3250_p2, %p3604_p5 }
 0xb2f   : > { %p3256_p6 = por %p3255_p9, %p3254_p4 }
 0xb30   : > { %p3252_p13 = pneg %p3251_p8 }
 0xb31   : > { %p3258_p3 = por %p3257_p0, %p3256_p6 }
 0xb33   : > { %p3259_p10 = pnand %p3258_p3, %p3252_p13 }
 0xb35   : > { %3262 = shalt.err (!%p3259_p10)
}
 0xb36   : > { %s3357_s5 = smov 128   ;;  %s3358_s23 = smov 8  }
 0xb37   : > { %2792 = dma.vmem_to_hbm [thread:$0]  (%p3604_p5), %s4194_s28, 512, %s4192_s17, %s1949_s19, %s3357_s5, %s3357_s5, %s3358_s23  }
 0xb38 PF: > { %s4307_s2 = sld [smem:[#allocation16_spill]]  ;;  %s4308_s29 = sld [smem:[#allocation19_spill]] }
 0xb39   : > { %p2824_p7 = scmp.ge.s32.totalorder %s3341_s16, 2 }
 0xb3e   : > { %s1992_s22 = sand.u32 1, %s4307_s2   ;;  %p4309_p11 = scmp.ne.s32.totalorder %s4308_s29, 0 }
 0xb3f   : > { %s1993_s30 = scalar_lea.sflag [#allocation4], %s1992_s22 }
 0xb40   : > { %p2812_p1 = pnand %p2824_p7, %p4309_p11 }
 0xb42   : > { %3308 = dma.done.wait (!%p2812_p1), %s1993_s30, 512  }
 0xb43   : > { %3310 = vsyncadd (!%p2812_p1), %s1993_s30, 4294966784  ;;  %s28_s16 = sadd.s32 1, %s3341_s16   ;;  %s4310_s30 = smov %s3317_s10 }
 0xb44   : > { %p25_p12 = scmp.ge.s32.totalorder %s28_s16, 10   ;;  %s4311_s10 = smov %s3321_s11 }
 0xb45   : > { %s4312_s11 = smov %s3627_s12  ;;  %s4313_s12 = smov %s3333_s14 }
 0xb46   : > { %s4314_s13 = smov %s3337_s15  ;;  %s4315_s14 = smov %s4318_s7 }
 0xb47   : > { %s4316_s15 = smov %s4322_s26  ;;  %27 = sbr.rel (!%p25_p12) target bundleno = 17 (0x11), region = 125 }
 0xb4e   :  { %2008 = vsyncpa [#allocation3], 1 }
 0xb4f   :  { %2010 = vsyncpa [#allocation3 + $0x1], 1 }
 0xb50   :  { %2011 = vsyncpa [#allocation6], 1 }
 0xb51   :  { %2012 = vsyncpa [#allocation9], 1 }
 0xb52   :  { %2013 = vsyncpa [#allocation4], 1 }
 0xb53   :  { %2015 = vsyncpa [#allocation4 + $0x1], 1 }

</bundles_post_ra>
